<compile_context>
chip_gen: v7x
topology: tpu7x:2x2x1
jax: 0.10.0
libtpu: 0.0.40
codegen_flags: <defaults>
</compile_context>

<pallas_src>
import math

import jax
import jax.numpy as jnp
from jax.experimental import pallas as pl
from jax.experimental.pallas import tpu as pltpu


# ----------------------------- in-kernel helpers -----------------------------

def _erf_approx(z):
    # Abramowitz & Stegun 7.1.26 rational approximation (|err| < 1.5e-7); uses only
    # exp / mul / add so it lowers cleanly on the TPU VPU/EUP and in interpret mode.
    p = 0.3275911
    a1, a2, a3, a4, a5 = 0.254829592, -0.284496736, 1.421413741, -1.453152027, 1.061405429
    sgn = jnp.where(z >= 0.0, 1.0, -1.0)
    az = jnp.abs(z)
    t = 1.0 / (1.0 + p * az)
    poly = t * (a1 + t * (a2 + t * (a3 + t * (a4 + t * a5))))
    return sgn * (1.0 - poly * jnp.exp(-az * az))


def _gelu_exact(x):
    # matches torch.nn.functional.gelu (erf form) to ~1e-7
    return 0.5 * x * (1.0 + _erf_approx(x * (1.0 / math.sqrt(2.0))))


def _layer_norm(v, g, b):
    mu = jnp.mean(v, axis=-1, keepdims=True)
    var = jnp.mean((v - mu) ** 2, axis=-1, keepdims=True)
    return (v - mu) * jax.lax.rsqrt(var + 1e-5) * g + b


# --------------------------------- kernel ------------------------------------

def _make_kernel(num_heads: int):
    def kernel(src_ref,
               wqkv_ref, bqkv_ref,
               wo_ref, bo_ref,
               g1_ref, be1_ref, g2_ref, be2_ref,
               w1_ref, b1_ref, w2_ref, b2_ref,
               cos_ref, sin_even_ref, sin_odd_ref,
               out_ref):
        BT, S, D = src_ref.shape
        R = BT * S                                   # rows processed this grid step
        hd = D // num_heads

        # ---- load the whole batch tile and flatten (batch, seq) into rows ----
        x = src_ref[...].reshape(R, D)               # leading-dim merge: layout-free

        # ---- norm1 + fused QKV projection (bf16 operands, f32 accumulation) ----
        n1 = _layer_norm(x, g1_ref[...], be1_ref[...])
        qkv = jnp.dot(n1.astype(jnp.bfloat16), wqkv_ref[...],
                      preferred_element_type=jnp.float32) + bqkv_ref[...]
        q = qkv[:, 0 * D:1 * D]                      # 1/sqrt(hd) already folded into
        k = qkv[:, 1 * D:2 * D]                      # the q weight/bias (wrapper)
        v = qkv[:, 2 * D:3 * D]

        # ---- rotary embedding (reproduces the module's cos(sin(.))/sin(sin(.)) quirk) ----
        # masked, pre-signed sin constants: no iota/select, and the masks zero out the
        # wrap-around lanes of the rolls.
        cosf = cos_ref[...]
        sine = sin_even_ref[...]                     # -sin on even lanes, 0 on odd
        sino = sin_odd_ref[...]                      # +sin on odd lanes,  0 on even

        def rope(t):
            return (t * cosf
                    + sine * jnp.roll(t, -1, axis=1)      # lane i <- t[i+1]
                    + sino * jnp.roll(t, 1, axis=1))       # lane i <- t[i-1]

        q_r = rope(q).astype(jnp.bfloat16).reshape(BT, S, D)
        k_r = rope(k).astype(jnp.bfloat16).reshape(BT, S, D)
        v_b = v.astype(jnp.bfloat16).reshape(BT, S, D)

        # ---- attention: per-head static loop, each einsum batched over the batch tile ----
        # (heads can't become a dot_general batch dim without a non-minor 4D transpose,
        #  which Mosaic does not lower; batching over BT keeps the MXU fed per push.)
        ctx_heads = []
        for h in range(num_heads):
            lo = h * hd
            qh = q_r[:, :, lo:lo + hd]               # (BT, S, hd)
            kh = k_r[:, :, lo:lo + hd]
            vh = v_b[:, :, lo:lo + hd]
            s = jnp.einsum('bqd,bkd->bqk', qh, kh,
                           preferred_element_type=jnp.float32)   # (BT, S, S)
            s = s - jnp.max(s, axis=-1, keepdims=True)
            e = jnp.exp(s)
            p = e / jnp.sum(e, axis=-1, keepdims=True)
            ctx_heads.append(jnp.einsum('bqk,bkd->bqd', p.astype(jnp.bfloat16), vh,
                                        preferred_element_type=jnp.float32))
        context = jnp.concatenate(ctx_heads, axis=-1).reshape(R, D)   # lane-dense (R, D)

        attn_out = jnp.dot(context.astype(jnp.bfloat16), wo_ref[...],
                           preferred_element_type=jnp.float32) + bo_ref[...]

        # ---- residual 1 ----
        x1 = x + attn_out

        # ---- norm2 + feed-forward ----
        n2 = _layer_norm(x1, g2_ref[...], be2_ref[...])
        h1 = jnp.dot(n2.astype(jnp.bfloat16), w1_ref[...],
                     preferred_element_type=jnp.float32) + b1_ref[...]
        h1 = _gelu_exact(h1)
        ffn = jnp.dot(h1.astype(jnp.bfloat16), w2_ref[...],
                      preferred_element_type=jnp.float32) + b2_ref[...]

        # ---- residual 2 : one full-tile write ----
        out_ref[...] = (x1 + ffn).reshape(BT, S, D)

    return kernel


# --------------------------------- wrapper -----------------------------------

def transformer_encoder_layer(src, params, num_heads, *, target_rows=256):
    B, S, D = src.shape
    hd = D // num_heads
    F = params['w1'].shape[1]

    # ---- batch-tile size: pack ~target_rows (batch*seq) rows per grid step ----
    bt = min(B, max(1, target_rows // S))
    while B % bt:                                    # bt must divide B
        bt -= 1
    # keep >= 2 grid steps for the two v7x TensorCores, but only if each step still
    # carries >= 128 rows (otherwise row packing wins).
    if B // bt < 2 and B % 2 == 0 and (B // 2) * S >= 128:
        bt = B // 2
    grid = (B // bt,)

    # ---- rotary constants (module stores sin(pos*div) into pos_enc[:,0::2] and then
    # takes cos()/sin() of it — reproduce exactly).  Sign and even/odd masks are folded
    # into two sin constants; everything tiled to (bt*S, D) rows so the kernel needs no
    # broadcast/tile/select at runtime.
    pos = jnp.arange(S, dtype=jnp.float32)[:, None]
    div = jnp.exp(jnp.arange(0, hd, 2, dtype=jnp.float32) * (-math.log(10000.0) / hd))
    angle = jnp.sin(pos * div)                                    # (S, hd//2)
    cos_h = jnp.repeat(jnp.cos(angle), 2, axis=1)                 # (S, hd)
    sin_h = jnp.repeat(jnp.sin(angle), 2, axis=1)
    cos_f = jnp.tile(cos_h, (1, num_heads))                       # (S, D)
    sin_f = jnp.tile(sin_h, (1, num_heads))
    even = (jnp.arange(D) % 2 == 0)
    sin_even = jnp.where(even[None, :], -sin_f, 0.0)              # (S, D)
    sin_odd = jnp.where(even[None, :], 0.0, sin_f)                # (S, D)
    cos_rows = jnp.tile(cos_f, (bt, 1))                           # (bt*S, D)
    sin_even_rows = jnp.tile(sin_even, (bt, 1))
    sin_odd_rows = jnp.tile(sin_odd, (bt, 1))

    # ---- fused QKV weights; attention scale folded into the q columns ----
    scale = 1.0 / math.sqrt(hd)
    wqkv = jnp.concatenate([params['wq'] * scale, params['wk'], params['wv']],
                           axis=1).astype(jnp.bfloat16)           # (D, 3D)
    bqkv = jnp.concatenate([params['bq'] * scale, params['bk'], params['bv']], axis=1)
    wo = params['wo'].astype(jnp.bfloat16)
    w1 = params['w1'].astype(jnp.bfloat16)
    w2 = params['w2'].astype(jnp.bfloat16)

    def const_spec(shape):
        # Grid-invariant operand (same whole-array block every step).
        # TODO(synk): at production sizes (D~1024, F~4096 -> ~24 MiB bf16 weights)
        # single-buffer these (pipeline_mode=pl.Buffered(1)): default double-buffering
        # would eat ~48 MiB of v7x's 64 MiB VMEM.  Irrelevant at the <100 KiB toy sizes.
        return pl.BlockSpec(shape, lambda b: (0,) * len(shape))

    in_specs = [
        pl.BlockSpec((bt, S, D), lambda b: (b, 0, 0)),            # src batch tile
        const_spec((D, 3 * D)), const_spec((1, 3 * D)),           # wqkv, bqkv
        const_spec((D, D)), const_spec((1, D)),                   # wo, bo
        const_spec((1, D)), const_spec((1, D)),                   # norm1 gamma, beta
        const_spec((1, D)), const_spec((1, D)),                   # norm2 gamma, beta
        const_spec((D, F)), const_spec((1, F)),                   # linear1
        const_spec((F, D)), const_spec((1, D)),                   # linear2
        const_spec((bt * S, D)),                                  # cos rows
        const_spec((bt * S, D)), const_spec((bt * S, D)),         # sin_even, sin_odd
    ]

    # TODO(synk): for production, keep D (and head_dim) multiples of 128 so the output
    # store and all q/k/v head slices stay lane-dense; at D<128 present the output as
    # (B, S*D/128, 128) from the wrapper instead.
    fn = pl.pallas_call(
        _make_kernel(num_heads),
        out_shape=jax.ShapeDtypeStruct((B, S, D), jnp.float32),
        grid=grid,
        in_specs=in_specs,
        out_specs=pl.BlockSpec((bt, S, D), lambda b: (b, 0, 0)),
        compiler_params=pltpu.CompilerParams(
            dimension_semantics=("parallel",),
            # <=56 MiB keeps headroom on v7x (64 MiB physical per TC); raise toward
            # ~100 MiB on v6e (128 MiB) once production seq/FFN tiles need it.
            vmem_limit_bytes=48 * 1024 * 1024,
        ),
    )
    return fn(src, wqkv, bqkv, wo, params['bo'],
              params['g1'], params['be1'], params['g2'], params['be2'],
              w1, params['b1'], w2, params['b2'],
              cos_rows, sin_even_rows, sin_odd_rows)


# ------------------------- pure-JAX reference (torch semantics, f32) ---------

def reference_forward(src, p, num_heads):
    B, S, D = src.shape
    hd = D // num_heads

    def ln(v, g, b):
        mu = jnp.mean(v, -1, keepdims=True)
        var = jnp.mean((v - mu) ** 2, -1, keepdims=True)
        return (v - mu) / jnp.sqrt(var + 1e-5) * g + b

    def rotary(x):  # x: (B, H, S, hd)
        pos = jnp.arange(S, dtype=jnp.float32)[:, None]
        div = jnp.exp(jnp.arange(0, hd, 2, dtype=jnp.float32) * (-math.log(10000.0) / hd))
        pe = jnp.sin(pos * div)
        c, s = jnp.cos(pe), jnp.sin(pe)
        xe, xo = x[..., 0::2], x[..., 1::2]
        re = xe * c - xo * s
        ro = xo * c + xe * s
        return jnp.stack([re, ro], axis=-1).reshape(x.shape)

    def heads(y):
        return y.reshape(B, S, num_heads, hd).transpose(0, 2, 1, 3)

    x = src
    n1 = ln(x, p['g1'], p['be1'])
    q = rotary(heads(n1 @ p['wq'] + p['bq']))
    k = rotary(heads(n1 @ p['wk'] + p['bk']))
    v = heads(n1 @ p['wv'] + p['bv'])
    scores = jnp.einsum('bhqd,bhkd->bhqk', q, k) / math.sqrt(hd)
    probs = jax.nn.softmax(scores, axis=-1)
    ctx = jnp.einsum('bhqk,bhkd->bhqd', probs, v).transpose(0, 2, 1, 3).reshape(B, S, D)
    x = x + (ctx @ p['wo'] + p['bo'])
    n2 = ln(x, p['g2'], p['be2'])
    h = jax.nn.gelu(n2 @ p['w1'] + p['b1'], approximate=False)
    return x + (h @ p['w2'] + p['b2'])


# ----------------------------------- main ------------------------------------

if __name__ == "__main__":
    B, S, D, H, FF = 2, 8, 32, 4, 64

    key = jax.random.PRNGKey(0)
    ks = jax.random.split(key, 12)

    def lin(k, fin, fout):
        kw, kb = jax.random.split(k)
        w = jax.random.normal(kw, (fin, fout), jnp.float32) / math.sqrt(fin)
        b = jax.random.normal(kb, (1, fout), jnp.float32) * 0.02
        return w, b

    wq, bq = lin(ks[0], D, D)
    wk, bk = lin(ks[1], D, D)
    wv, bv = lin(ks[2], D, D)
    wo, bo = lin(ks[3], D, D)
    w1, b1 = lin(ks[4], D, FF)
    w2, b2 = lin(ks[5], FF, D)
    params = dict(
        wq=wq, bq=bq, wk=wk, bk=bk, wv=wv, bv=bv, wo=wo, bo=bo,
        w1=w1, b1=b1, w2=w2, b2=b2,
        g1=1.0 + 0.1 * jax.random.normal(ks[6], (1, D), jnp.float32),
        be1=0.1 * jax.random.normal(ks[7], (1, D), jnp.float32),
        g2=1.0 + 0.1 * jax.random.normal(ks[8], (1, D), jnp.float32),
        be2=0.1 * jax.random.normal(ks[9], (1, D), jnp.float32),
    )

    src = jax.random.normal(ks[10], (B, S, D), jnp.float32)

    out = transformer_encoder_layer(src, params, num_heads=H)
    out = jax.block_until_ready(out)

    ref = reference_forward(src, params, num_heads=H)
    assert out.shape == (B, S, D)
    assert bool(jnp.all(jnp.isfinite(out)))
    # Tolerance accounts for bf16 MXU operands vs. the pure-f32 torch-semantics
    # reference; structural bugs (wrong rotary / missing residual / bad softmax)
    # would produce O(1) deviations, far above this bound.
    assert bool(jnp.allclose(out, ref, atol=1e-1, rtol=1e-1)), \
        float(jnp.max(jnp.abs(out - ref)))

    print("KERNEL_OK")
</pallas_src>

<mosaic_0001>
module attributes {stable_mosaic.version = 11 : i64} {
  func.func @kernel(%arg0: i32, %arg1: memref<2x8x32xf32, #tpu.memory_space<vmem>>, %arg2: memref<32x96xbf16, #tpu.memory_space<vmem>>, %arg3: memref<1x96xf32, #tpu.memory_space<vmem>>, %arg4: memref<32x32xbf16, #tpu.memory_space<vmem>>, %arg5: memref<1x32xf32, #tpu.memory_space<vmem>>, %arg6: memref<1x32xf32, #tpu.memory_space<vmem>>, %arg7: memref<1x32xf32, #tpu.memory_space<vmem>>, %arg8: memref<1x32xf32, #tpu.memory_space<vmem>>, %arg9: memref<1x32xf32, #tpu.memory_space<vmem>>, %arg10: memref<32x64xbf16, #tpu.memory_space<vmem>>, %arg11: memref<1x64xf32, #tpu.memory_space<vmem>>, %arg12: memref<64x32xbf16, #tpu.memory_space<vmem>>, %arg13: memref<1x32xf32, #tpu.memory_space<vmem>>, %arg14: memref<16x32xf32, #tpu.memory_space<vmem>>, %arg15: memref<16x32xf32, #tpu.memory_space<vmem>>, %arg16: memref<16x32xf32, #tpu.memory_space<vmem>>, %arg17: memref<2x8x32xf32, #tpu.memory_space<vmem>>) attributes {dimension_semantics = [#tpu.dimension_semantics<parallel>], iteration_bounds = array<i64: 1>, scalar_prefetch = 0 : i64, scratch_operands = 0 : i64, tpu.core_type = #tpu.core_type<tc>, window_params = [{transform_indices = @transform_0, window_bounds = array<i64: 2, 8, 32>}, {pipeline_mode = #tpu.pipeline_mode<synchronous>, transform_indices = @transform_1, window_bounds = array<i64: 32, 96>}, {pipeline_mode = #tpu.pipeline_mode<synchronous>, transform_indices = @transform_2, window_bounds = array<i64: 1, 96>}, {pipeline_mode = #tpu.pipeline_mode<synchronous>, transform_indices = @transform_3, window_bounds = array<i64: 32, 32>}, {pipeline_mode = #tpu.pipeline_mode<synchronous>, transform_indices = @transform_4, window_bounds = array<i64: 1, 32>}, {pipeline_mode = #tpu.pipeline_mode<synchronous>, transform_indices = @transform_5, window_bounds = array<i64: 1, 32>}, {pipeline_mode = #tpu.pipeline_mode<synchronous>, transform_indices = @transform_6, window_bounds = array<i64: 1, 32>}, {pipeline_mode = #tpu.pipeline_mode<synchronous>, transform_indices = @transform_7, window_bounds = array<i64: 1, 32>}, {pipeline_mode = #tpu.pipeline_mode<synchronous>, transform_indices = @transform_8, window_bounds = array<i64: 1, 32>}, {pipeline_mode = #tpu.pipeline_mode<synchronous>, transform_indices = @transform_9, window_bounds = array<i64: 32, 64>}, {pipeline_mode = #tpu.pipeline_mode<synchronous>, transform_indices = @transform_10, window_bounds = array<i64: 1, 64>}, {pipeline_mode = #tpu.pipeline_mode<synchronous>, transform_indices = @transform_11, window_bounds = array<i64: 64, 32>}, {pipeline_mode = #tpu.pipeline_mode<synchronous>, transform_indices = @transform_12, window_bounds = array<i64: 1, 32>}, {pipeline_mode = #tpu.pipeline_mode<synchronous>, transform_indices = @transform_13, window_bounds = array<i64: 16, 32>}, {pipeline_mode = #tpu.pipeline_mode<synchronous>, transform_indices = @transform_14, window_bounds = array<i64: 16, 32>}, {pipeline_mode = #tpu.pipeline_mode<synchronous>, transform_indices = @transform_15, window_bounds = array<i64: 16, 32>}, {transform_indices = @transform_16, window_bounds = array<i64: 2, 8, 32>}]} {
    %c0 = arith.constant 0 : index
    %c0_0 = arith.constant 0 : index
    %c0_1 = arith.constant 0 : index
    %0 = vector.load %arg1[%c0, %c0_0, %c0_1] : memref<2x8x32xf32, #tpu.memory_space<vmem>>, vector<2x8x32xf32>
    %1 = vector.shape_cast %0 : vector<2x8x32xf32> to vector<16x32xf32>
    %c0_2 = arith.constant 0 : index
    %c0_3 = arith.constant 0 : index
    %2 = vector.load %arg6[%c0_2, %c0_3] : memref<1x32xf32, #tpu.memory_space<vmem>>, vector<1x32xf32>
    %c0_4 = arith.constant 0 : index
    %c0_5 = arith.constant 0 : index
    %3 = vector.load %arg7[%c0_4, %c0_5] : memref<1x32xf32, #tpu.memory_space<vmem>>, vector<1x32xf32>
    %cst = arith.constant dense<0.000000e+00> : vector<16xf32>
    %4 = vector.multi_reduction <add>, %1, %cst [1] : vector<16x32xf32> to vector<16xf32>
    %5 = vector.shape_cast %4 : vector<16xf32> to vector<16x1xf32>
    %cst_6 = arith.constant 3.200000e+01 : f32
    %6 = vector.broadcast %cst_6 : f32 to vector<16x1xf32>
    %7 = arith.divf %5, %6 : vector<16x1xf32>
    %8 = vector.broadcast %7 : vector<16x1xf32> to vector<16x32xf32>
    %9 = arith.subf %1, %8 : vector<16x32xf32>
    %10 = arith.mulf %9, %9 : vector<16x32xf32>
    %cst_7 = arith.constant dense<0.000000e+00> : vector<16xf32>
    %11 = vector.multi_reduction <add>, %10, %cst_7 [1] : vector<16x32xf32> to vector<16xf32>
    %12 = vector.shape_cast %11 : vector<16xf32> to vector<16x1xf32>
    %cst_8 = arith.constant 3.200000e+01 : f32
    %13 = vector.broadcast %cst_8 : f32 to vector<16x1xf32>
    %14 = arith.divf %12, %13 : vector<16x1xf32>
    %15 = vector.broadcast %7 : vector<16x1xf32> to vector<16x32xf32>
    %16 = arith.subf %1, %15 : vector<16x32xf32>
    %cst_9 = arith.constant 9.99999974E-6 : f32
    %17 = vector.broadcast %cst_9 : f32 to vector<16x1xf32>
    %18 = arith.addf %14, %17 : vector<16x1xf32>
    %19 = math.rsqrt %18 : vector<16x1xf32>
    %20 = vector.broadcast %19 : vector<16x1xf32> to vector<16x32xf32>
    %21 = arith.mulf %16, %20 : vector<16x32xf32>
    %22 = vector.broadcast %2 : vector<1x32xf32> to vector<16x32xf32>
    %23 = arith.mulf %21, %22 : vector<16x32xf32>
    %24 = vector.broadcast %3 : vector<1x32xf32> to vector<16x32xf32>
    %25 = arith.addf %23, %24 : vector<16x32xf32>
    %26 = arith.truncf %25 : vector<16x32xf32> to vector<16x32xbf16>
    %c0_10 = arith.constant 0 : index
    %c0_11 = arith.constant 0 : index
    %27 = vector.load %arg2[%c0_10, %c0_11] : memref<32x96xbf16, #tpu.memory_space<vmem>>, vector<32x96xbf16>
    %cst_12 = arith.constant dense<0.000000e+00> : vector<16x96xf32>
    %28 = tpu.matmul %26, %27, %cst_12 {dimension_numbers = #tpu.dot_dimension_numbers<[1], [0], [0], [1], [0, 0, 1, 1], [], []>} : vector<16x32xbf16>, vector<32x96xbf16>, vector<16x96xf32> -> vector<16x96xf32>
    %c0_13 = arith.constant 0 : index
    %c0_14 = arith.constant 0 : index
    %29 = vector.load %arg3[%c0_13, %c0_14] : memref<1x96xf32, #tpu.memory_space<vmem>>, vector<1x96xf32>
    %30 = vector.broadcast %29 : vector<1x96xf32> to vector<16x96xf32>
    %31 = arith.addf %28, %30 : vector<16x96xf32>
    %32 = vector.extract_strided_slice %31 {offsets = [0, 0], sizes = [16, 32], strides = [1, 1]} : vector<16x96xf32> to vector<16x32xf32>
    %33 = vector.extract_strided_slice %31 {offsets = [0, 32], sizes = [16, 32], strides = [1, 1]} : vector<16x96xf32> to vector<16x32xf32>
    %34 = vector.extract_strided_slice %31 {offsets = [0, 64], sizes = [16, 32], strides = [1, 1]} : vector<16x96xf32> to vector<16x32xf32>
    %c0_15 = arith.constant 0 : index
    %c0_16 = arith.constant 0 : index
    %35 = vector.load %arg14[%c0_15, %c0_16] : memref<16x32xf32, #tpu.memory_space<vmem>>, vector<16x32xf32>
    %c0_17 = arith.constant 0 : index
    %c0_18 = arith.constant 0 : index
    %36 = vector.load %arg15[%c0_17, %c0_18] : memref<16x32xf32, #tpu.memory_space<vmem>>, vector<16x32xf32>
    %c0_19 = arith.constant 0 : index
    %c0_20 = arith.constant 0 : index
    %37 = vector.load %arg16[%c0_19, %c0_20] : memref<16x32xf32, #tpu.memory_space<vmem>>, vector<16x32xf32>
    %38 = arith.mulf %32, %35 : vector<16x32xf32>
    %39 = vector.extract_strided_slice %32 {offsets = [0, 1], sizes = [16, 31], strides = [1, 1]} : vector<16x32xf32> to vector<16x31xf32>
    %40 = vector.extract_strided_slice %32 {offsets = [0, 0], sizes = [16, 1], strides = [1, 1]} : vector<16x32xf32> to vector<16x1xf32>
    %41 = tpu.concatenate %39, %40 in 1 : vector<16x31xf32>, vector<16x1xf32> -> vector<16x32xf32>
    %42 = arith.mulf %36, %41 : vector<16x32xf32>
    %43 = arith.addf %38, %42 : vector<16x32xf32>
    %44 = vector.extract_strided_slice %32 {offsets = [0, 31], sizes = [16, 1], strides = [1, 1]} : vector<16x32xf32> to vector<16x1xf32>
    %45 = vector.extract_strided_slice %32 {offsets = [0, 0], sizes = [16, 31], strides = [1, 1]} : vector<16x32xf32> to vector<16x31xf32>
    %46 = tpu.concatenate %44, %45 in 1 : vector<16x1xf32>, vector<16x31xf32> -> vector<16x32xf32>
    %47 = arith.mulf %37, %46 : vector<16x32xf32>
    %48 = arith.addf %43, %47 : vector<16x32xf32>
    %49 = arith.truncf %48 : vector<16x32xf32> to vector<16x32xbf16>
    %50 = vector.shape_cast %49 : vector<16x32xbf16> to vector<2x8x32xbf16>
    %51 = arith.mulf %33, %35 : vector<16x32xf32>
    %52 = vector.extract_strided_slice %33 {offsets = [0, 1], sizes = [16, 31], strides = [1, 1]} : vector<16x32xf32> to vector<16x31xf32>
    %53 = vector.extract_strided_slice %33 {offsets = [0, 0], sizes = [16, 1], strides = [1, 1]} : vector<16x32xf32> to vector<16x1xf32>
    %54 = tpu.concatenate %52, %53 in 1 : vector<16x31xf32>, vector<16x1xf32> -> vector<16x32xf32>
    %55 = arith.mulf %36, %54 : vector<16x32xf32>
    %56 = arith.addf %51, %55 : vector<16x32xf32>
    %57 = vector.extract_strided_slice %33 {offsets = [0, 31], sizes = [16, 1], strides = [1, 1]} : vector<16x32xf32> to vector<16x1xf32>
    %58 = vector.extract_strided_slice %33 {offsets = [0, 0], sizes = [16, 31], strides = [1, 1]} : vector<16x32xf32> to vector<16x31xf32>
    %59 = tpu.concatenate %57, %58 in 1 : vector<16x1xf32>, vector<16x31xf32> -> vector<16x32xf32>
    %60 = arith.mulf %37, %59 : vector<16x32xf32>
    %61 = arith.addf %56, %60 : vector<16x32xf32>
    %62 = arith.truncf %61 : vector<16x32xf32> to vector<16x32xbf16>
    %63 = vector.shape_cast %62 : vector<16x32xbf16> to vector<2x8x32xbf16>
    %64 = arith.truncf %34 : vector<16x32xf32> to vector<16x32xbf16>
    %65 = vector.shape_cast %64 : vector<16x32xbf16> to vector<2x8x32xbf16>
    %66 = vector.extract_strided_slice %50 {offsets = [0, 0, 0], sizes = [2, 8, 8], strides = [1, 1, 1]} : vector<2x8x32xbf16> to vector<2x8x8xbf16>
    %67 = vector.extract_strided_slice %63 {offsets = [0, 0, 0], sizes = [2, 8, 8], strides = [1, 1, 1]} : vector<2x8x32xbf16> to vector<2x8x8xbf16>
    %68 = vector.extract_strided_slice %65 {offsets = [0, 0, 0], sizes = [2, 8, 8], strides = [1, 1, 1]} : vector<2x8x32xbf16> to vector<2x8x8xbf16>
    "tpu.trace_start"() <{level = 10 : i32, message = "bqd,bkd->bqk"}> : () -> ()
    %cst_21 = arith.constant dense<0.000000e+00> : vector<2x8x8xf32>
    %69 = tpu.matmul %66, %67, %cst_21 {dimension_numbers = #tpu.dot_dimension_numbers<[2], [2], [1], [1], [0, 0, 0, 1, 1, 1], [0], [0]>} : vector<2x8x8xbf16>, vector<2x8x8xbf16>, vector<2x8x8xf32> -> vector<2x8x8xf32>
    "tpu.trace_stop"() : () -> ()
    %cst_22 = arith.constant dense<0xFF800000> : vector<2x8xf32>
    %70 = vector.multi_reduction <maximumf>, %69, %cst_22 [2] : vector<2x8x8xf32> to vector<2x8xf32>
    %71 = vector.shape_cast %70 : vector<2x8xf32> to vector<2x8x1xf32>
    %72 = vector.broadcast %71 : vector<2x8x1xf32> to vector<2x8x8xf32>
    %73 = arith.subf %69, %72 : vector<2x8x8xf32>
    %74 = math.exp %73 : vector<2x8x8xf32>
    %cst_23 = arith.constant dense<0.000000e+00> : vector<2x8xf32>
    %75 = vector.multi_reduction <add>, %74, %cst_23 [2] : vector<2x8x8xf32> to vector<2x8xf32>
    %76 = vector.shape_cast %75 : vector<2x8xf32> to vector<2x8x1xf32>
    %77 = vector.broadcast %76 : vector<2x8x1xf32> to vector<2x8x8xf32>
    %78 = arith.divf %74, %77 : vector<2x8x8xf32>
    %79 = arith.truncf %78 : vector<2x8x8xf32> to vector<2x8x8xbf16>
    "tpu.trace_start"() <{level = 10 : i32, message = "bqk,bkd->bqd"}> : () -> ()
    %cst_24 = arith.constant dense<0.000000e+00> : vector<2x8x8xf32>
    %80 = tpu.matmul %79, %68, %cst_24 {dimension_numbers = #tpu.dot_dimension_numbers<[2], [1], [1], [2], [0, 0, 0, 1, 1, 2], [0], [0]>} : vector<2x8x8xbf16>, vector<2x8x8xbf16>, vector<2x8x8xf32> -> vector<2x8x8xf32>
    "tpu.trace_stop"() : () -> ()
    %81 = vector.extract_strided_slice %50 {offsets = [0, 0, 8], sizes = [2, 8, 8], strides = [1, 1, 1]} : vector<2x8x32xbf16> to vector<2x8x8xbf16>
    %82 = vector.extract_strided_slice %63 {offsets = [0, 0, 8], sizes = [2, 8, 8], strides = [1, 1, 1]} : vector<2x8x32xbf16> to vector<2x8x8xbf16>
    %83 = vector.extract_strided_slice %65 {offsets = [0, 0, 8], sizes = [2, 8, 8], strides = [1, 1, 1]} : vector<2x8x32xbf16> to vector<2x8x8xbf16>
    "tpu.trace_start"() <{level = 10 : i32, message = "bqd,bkd->bqk"}> : () -> ()
    %cst_25 = arith.constant dense<0.000000e+00> : vector<2x8x8xf32>
    %84 = tpu.matmul %81, %82, %cst_25 {dimension_numbers = #tpu.dot_dimension_numbers<[2], [2], [1], [1], [0, 0, 0, 1, 1, 1], [0], [0]>} : vector<2x8x8xbf16>, vector<2x8x8xbf16>, vector<2x8x8xf32> -> vector<2x8x8xf32>
    "tpu.trace_stop"() : () -> ()
    %cst_26 = arith.constant dense<0xFF800000> : vector<2x8xf32>
    %85 = vector.multi_reduction <maximumf>, %84, %cst_26 [2] : vector<2x8x8xf32> to vector<2x8xf32>
    %86 = vector.shape_cast %85 : vector<2x8xf32> to vector<2x8x1xf32>
    %87 = vector.broadcast %86 : vector<2x8x1xf32> to vector<2x8x8xf32>
    %88 = arith.subf %84, %87 : vector<2x8x8xf32>
    %89 = math.exp %88 : vector<2x8x8xf32>
    %cst_27 = arith.constant dense<0.000000e+00> : vector<2x8xf32>
    %90 = vector.multi_reduction <add>, %89, %cst_27 [2] : vector<2x8x8xf32> to vector<2x8xf32>
    %91 = vector.shape_cast %90 : vector<2x8xf32> to vector<2x8x1xf32>
    %92 = vector.broadcast %91 : vector<2x8x1xf32> to vector<2x8x8xf32>
    %93 = arith.divf %89, %92 : vector<2x8x8xf32>
    %94 = arith.truncf %93 : vector<2x8x8xf32> to vector<2x8x8xbf16>
    "tpu.trace_start"() <{level = 10 : i32, message = "bqk,bkd->bqd"}> : () -> ()
    %cst_28 = arith.constant dense<0.000000e+00> : vector<2x8x8xf32>
    %95 = tpu.matmul %94, %83, %cst_28 {dimension_numbers = #tpu.dot_dimension_numbers<[2], [1], [1], [2], [0, 0, 0, 1, 1, 2], [0], [0]>} : vector<2x8x8xbf16>, vector<2x8x8xbf16>, vector<2x8x8xf32> -> vector<2x8x8xf32>
    "tpu.trace_stop"() : () -> ()
    %96 = vector.extract_strided_slice %50 {offsets = [0, 0, 16], sizes = [2, 8, 8], strides = [1, 1, 1]} : vector<2x8x32xbf16> to vector<2x8x8xbf16>
    %97 = vector.extract_strided_slice %63 {offsets = [0, 0, 16], sizes = [2, 8, 8], strides = [1, 1, 1]} : vector<2x8x32xbf16> to vector<2x8x8xbf16>
    %98 = vector.extract_strided_slice %65 {offsets = [0, 0, 16], sizes = [2, 8, 8], strides = [1, 1, 1]} : vector<2x8x32xbf16> to vector<2x8x8xbf16>
    "tpu.trace_start"() <{level = 10 : i32, message = "bqd,bkd->bqk"}> : () -> ()
    %cst_29 = arith.constant dense<0.000000e+00> : vector<2x8x8xf32>
    %99 = tpu.matmul %96, %97, %cst_29 {dimension_numbers = #tpu.dot_dimension_numbers<[2], [2], [1], [1], [0, 0, 0, 1, 1, 1], [0], [0]>} : vector<2x8x8xbf16>, vector<2x8x8xbf16>, vector<2x8x8xf32> -> vector<2x8x8xf32>
    "tpu.trace_stop"() : () -> ()
    %cst_30 = arith.constant dense<0xFF800000> : vector<2x8xf32>
    %100 = vector.multi_reduction <maximumf>, %99, %cst_30 [2] : vector<2x8x8xf32> to vector<2x8xf32>
    %101 = vector.shape_cast %100 : vector<2x8xf32> to vector<2x8x1xf32>
    %102 = vector.broadcast %101 : vector<2x8x1xf32> to vector<2x8x8xf32>
    %103 = arith.subf %99, %102 : vector<2x8x8xf32>
    %104 = math.exp %103 : vector<2x8x8xf32>
    %cst_31 = arith.constant dense<0.000000e+00> : vector<2x8xf32>
    %105 = vector.multi_reduction <add>, %104, %cst_31 [2] : vector<2x8x8xf32> to vector<2x8xf32>
    %106 = vector.shape_cast %105 : vector<2x8xf32> to vector<2x8x1xf32>
    %107 = vector.broadcast %106 : vector<2x8x1xf32> to vector<2x8x8xf32>
    %108 = arith.divf %104, %107 : vector<2x8x8xf32>
    %109 = arith.truncf %108 : vector<2x8x8xf32> to vector<2x8x8xbf16>
    "tpu.trace_start"() <{level = 10 : i32, message = "bqk,bkd->bqd"}> : () -> ()
    %cst_32 = arith.constant dense<0.000000e+00> : vector<2x8x8xf32>
    %110 = tpu.matmul %109, %98, %cst_32 {dimension_numbers = #tpu.dot_dimension_numbers<[2], [1], [1], [2], [0, 0, 0, 1, 1, 2], [0], [0]>} : vector<2x8x8xbf16>, vector<2x8x8xbf16>, vector<2x8x8xf32> -> vector<2x8x8xf32>
    "tpu.trace_stop"() : () -> ()
    %111 = vector.extract_strided_slice %50 {offsets = [0, 0, 24], sizes = [2, 8, 8], strides = [1, 1, 1]} : vector<2x8x32xbf16> to vector<2x8x8xbf16>
    %112 = vector.extract_strided_slice %63 {offsets = [0, 0, 24], sizes = [2, 8, 8], strides = [1, 1, 1]} : vector<2x8x32xbf16> to vector<2x8x8xbf16>
    %113 = vector.extract_strided_slice %65 {offsets = [0, 0, 24], sizes = [2, 8, 8], strides = [1, 1, 1]} : vector<2x8x32xbf16> to vector<2x8x8xbf16>
    "tpu.trace_start"() <{level = 10 : i32, message = "bqd,bkd->bqk"}> : () -> ()
    %cst_33 = arith.constant dense<0.000000e+00> : vector<2x8x8xf32>
    %114 = tpu.matmul %111, %112, %cst_33 {dimension_numbers = #tpu.dot_dimension_numbers<[2], [2], [1], [1], [0, 0, 0, 1, 1, 1], [0], [0]>} : vector<2x8x8xbf16>, vector<2x8x8xbf16>, vector<2x8x8xf32> -> vector<2x8x8xf32>
    "tpu.trace_stop"() : () -> ()
    %cst_34 = arith.constant dense<0xFF800000> : vector<2x8xf32>
    %115 = vector.multi_reduction <maximumf>, %114, %cst_34 [2] : vector<2x8x8xf32> to vector<2x8xf32>
    %116 = vector.shape_cast %115 : vector<2x8xf32> to vector<2x8x1xf32>
    %117 = vector.broadcast %116 : vector<2x8x1xf32> to vector<2x8x8xf32>
    %118 = arith.subf %114, %117 : vector<2x8x8xf32>
    %119 = math.exp %118 : vector<2x8x8xf32>
    %cst_35 = arith.constant dense<0.000000e+00> : vector<2x8xf32>
    %120 = vector.multi_reduction <add>, %119, %cst_35 [2] : vector<2x8x8xf32> to vector<2x8xf32>
    %121 = vector.shape_cast %120 : vector<2x8xf32> to vector<2x8x1xf32>
    %122 = vector.broadcast %121 : vector<2x8x1xf32> to vector<2x8x8xf32>
    %123 = arith.divf %119, %122 : vector<2x8x8xf32>
    %124 = arith.truncf %123 : vector<2x8x8xf32> to vector<2x8x8xbf16>
    "tpu.trace_start"() <{level = 10 : i32, message = "bqk,bkd->bqd"}> : () -> ()
    %cst_36 = arith.constant dense<0.000000e+00> : vector<2x8x8xf32>
    %125 = tpu.matmul %124, %113, %cst_36 {dimension_numbers = #tpu.dot_dimension_numbers<[2], [1], [1], [2], [0, 0, 0, 1, 1, 2], [0], [0]>} : vector<2x8x8xbf16>, vector<2x8x8xbf16>, vector<2x8x8xf32> -> vector<2x8x8xf32>
    "tpu.trace_stop"() : () -> ()
    %126 = tpu.concatenate %80, %95, %110, %125 in 2 : vector<2x8x8xf32>, vector<2x8x8xf32>, vector<2x8x8xf32>, vector<2x8x8xf32> -> vector<2x8x32xf32>
    %127 = vector.shape_cast %126 : vector<2x8x32xf32> to vector<16x32xf32>
    %128 = arith.truncf %127 : vector<16x32xf32> to vector<16x32xbf16>
    %c0_37 = arith.constant 0 : index
    %c0_38 = arith.constant 0 : index
    %129 = vector.load %arg4[%c0_37, %c0_38] : memref<32x32xbf16, #tpu.memory_space<vmem>>, vector<32x32xbf16>
    %cst_39 = arith.constant dense<0.000000e+00> : vector<16x32xf32>
    %130 = tpu.matmul %128, %129, %cst_39 {dimension_numbers = #tpu.dot_dimension_numbers<[1], [0], [0], [1], [0, 0, 1, 1], [], []>} : vector<16x32xbf16>, vector<32x32xbf16>, vector<16x32xf32> -> vector<16x32xf32>
    %c0_40 = arith.constant 0 : index
    %c0_41 = arith.constant 0 : index
    %131 = vector.load %arg5[%c0_40, %c0_41] : memref<1x32xf32, #tpu.memory_space<vmem>>, vector<1x32xf32>
    %132 = vector.broadcast %131 : vector<1x32xf32> to vector<16x32xf32>
    %133 = arith.addf %130, %132 : vector<16x32xf32>
    %134 = arith.addf %1, %133 : vector<16x32xf32>
    %c0_42 = arith.constant 0 : index
    %c0_43 = arith.constant 0 : index
    %135 = vector.load %arg8[%c0_42, %c0_43] : memref<1x32xf32, #tpu.memory_space<vmem>>, vector<1x32xf32>
    %c0_44 = arith.constant 0 : index
    %c0_45 = arith.constant 0 : index
    %136 = vector.load %arg9[%c0_44, %c0_45] : memref<1x32xf32, #tpu.memory_space<vmem>>, vector<1x32xf32>
    %cst_46 = arith.constant dense<0.000000e+00> : vector<16xf32>
    %137 = vector.multi_reduction <add>, %134, %cst_46 [1] : vector<16x32xf32> to vector<16xf32>
    %138 = vector.shape_cast %137 : vector<16xf32> to vector<16x1xf32>
    %cst_47 = arith.constant 3.200000e+01 : f32
    %139 = vector.broadcast %cst_47 : f32 to vector<16x1xf32>
    %140 = arith.divf %138, %139 : vector<16x1xf32>
    %141 = vector.broadcast %140 : vector<16x1xf32> to vector<16x32xf32>
    %142 = arith.subf %134, %141 : vector<16x32xf32>
    %143 = arith.mulf %142, %142 : vector<16x32xf32>
    %cst_48 = arith.constant dense<0.000000e+00> : vector<16xf32>
    %144 = vector.multi_reduction <add>, %143, %cst_48 [1] : vector<16x32xf32> to vector<16xf32>
    %145 = vector.shape_cast %144 : vector<16xf32> to vector<16x1xf32>
    %cst_49 = arith.constant 3.200000e+01 : f32
    %146 = vector.broadcast %cst_49 : f32 to vector<16x1xf32>
    %147 = arith.divf %145, %146 : vector<16x1xf32>
    %148 = vector.broadcast %140 : vector<16x1xf32> to vector<16x32xf32>
    %149 = arith.subf %134, %148 : vector<16x32xf32>
    %cst_50 = arith.constant 9.99999974E-6 : f32
    %150 = vector.broadcast %cst_50 : f32 to vector<16x1xf32>
    %151 = arith.addf %147, %150 : vector<16x1xf32>
    %152 = math.rsqrt %151 : vector<16x1xf32>
    %153 = vector.broadcast %152 : vector<16x1xf32> to vector<16x32xf32>
    %154 = arith.mulf %149, %153 : vector<16x32xf32>
    %155 = vector.broadcast %135 : vector<1x32xf32> to vector<16x32xf32>
    %156 = arith.mulf %154, %155 : vector<16x32xf32>
    %157 = vector.broadcast %136 : vector<1x32xf32> to vector<16x32xf32>
    %158 = arith.addf %156, %157 : vector<16x32xf32>
    %159 = arith.truncf %158 : vector<16x32xf32> to vector<16x32xbf16>
    %c0_51 = arith.constant 0 : index
    %c0_52 = arith.constant 0 : index
    %160 = vector.load %arg10[%c0_51, %c0_52] : memref<32x64xbf16, #tpu.memory_space<vmem>>, vector<32x64xbf16>
    %cst_53 = arith.constant dense<0.000000e+00> : vector<16x64xf32>
    %161 = tpu.matmul %159, %160, %cst_53 {dimension_numbers = #tpu.dot_dimension_numbers<[1], [0], [0], [1], [0, 0, 1, 1], [], []>} : vector<16x32xbf16>, vector<32x64xbf16>, vector<16x64xf32> -> vector<16x64xf32>
    %c0_54 = arith.constant 0 : index
    %c0_55 = arith.constant 0 : index
    %162 = vector.load %arg11[%c0_54, %c0_55] : memref<1x64xf32, #tpu.memory_space<vmem>>, vector<1x64xf32>
    %163 = vector.broadcast %162 : vector<1x64xf32> to vector<16x64xf32>
    %164 = arith.addf %161, %163 : vector<16x64xf32>
    %cst_56 = arith.constant 5.000000e-01 : f32
    %165 = vector.broadcast %cst_56 : f32 to vector<16x64xf32>
    %166 = arith.mulf %165, %164 : vector<16x64xf32>
    %cst_57 = arith.constant 0.707106769 : f32
    %167 = vector.broadcast %cst_57 : f32 to vector<16x64xf32>
    %168 = arith.mulf %164, %167 : vector<16x64xf32>
    %cst_58 = arith.constant 0.000000e+00 : f32
    %169 = vector.broadcast %cst_58 : f32 to vector<16x64xf32>
    %170 = arith.cmpf oge, %168, %169 : vector<16x64xf32>
    %cst_59 = arith.constant 1.000000e+00 : f32
    %cst_60 = arith.constant -1.000000e+00 : f32
    %171 = vector.broadcast %cst_59 : f32 to vector<16x64xf32>
    %172 = vector.broadcast %cst_60 : f32 to vector<16x64xf32>
    %173 = arith.select %170, %171, %172 : vector<16x64xi1>, vector<16x64xf32>
    %174 = math.absf %168 : vector<16x64xf32>
    %cst_61 = arith.constant 0.327591091 : f32
    %175 = vector.broadcast %cst_61 : f32 to vector<16x64xf32>
    %176 = arith.mulf %175, %174 : vector<16x64xf32>
    %cst_62 = arith.constant 1.000000e+00 : f32
    %177 = vector.broadcast %cst_62 : f32 to vector<16x64xf32>
    %178 = arith.addf %177, %176 : vector<16x64xf32>
    %cst_63 = arith.constant 1.000000e+00 : f32
    %179 = vector.broadcast %cst_63 : f32 to vector<16x64xf32>
    %180 = arith.divf %179, %178 : vector<16x64xf32>
    %cst_64 = arith.constant 1.06140542 : f32
    %181 = vector.broadcast %cst_64 : f32 to vector<16x64xf32>
    %182 = arith.mulf %180, %181 : vector<16x64xf32>
    %cst_65 = arith.constant -1.45315206 : f32
    %183 = vector.broadcast %cst_65 : f32 to vector<16x64xf32>
    %184 = arith.addf %183, %182 : vector<16x64xf32>
    %185 = arith.mulf %180, %184 : vector<16x64xf32>
    %cst_66 = arith.constant 1.42141378 : f32
    %186 = vector.broadcast %cst_66 : f32 to vector<16x64xf32>
    %187 = arith.addf %186, %185 : vector<16x64xf32>
    %188 = arith.mulf %180, %187 : vector<16x64xf32>
    %cst_67 = arith.constant -0.284496725 : f32
    %189 = vector.broadcast %cst_67 : f32 to vector<16x64xf32>
    %190 = arith.addf %189, %188 : vector<16x64xf32>
    %191 = arith.mulf %180, %190 : vector<16x64xf32>
    %cst_68 = arith.constant 0.254829586 : f32
    %192 = vector.broadcast %cst_68 : f32 to vector<16x64xf32>
    %193 = arith.addf %192, %191 : vector<16x64xf32>
    %194 = arith.mulf %180, %193 : vector<16x64xf32>
    %cst_69 = arith.constant 0.000000e+00 : f32
    %195 = vector.broadcast %cst_69 : f32 to vector<16x64xf32>
    %196 = arith.subf %195, %174 : vector<16x64xf32>
    %197 = arith.mulf %196, %174 : vector<16x64xf32>
    %198 = math.exp %197 : vector<16x64xf32>
    %199 = arith.mulf %194, %198 : vector<16x64xf32>
    %cst_70 = arith.constant 1.000000e+00 : f32
    %200 = vector.broadcast %cst_70 : f32 to vector<16x64xf32>
    %201 = arith.subf %200, %199 : vector<16x64xf32>
    %202 = arith.mulf %173, %201 : vector<16x64xf32>
    %cst_71 = arith.constant 1.000000e+00 : f32
    %203 = vector.broadcast %cst_71 : f32 to vector<16x64xf32>
    %204 = arith.addf %203, %202 : vector<16x64xf32>
    %205 = arith.mulf %166, %204 : vector<16x64xf32>
    %206 = arith.truncf %205 : vector<16x64xf32> to vector<16x64xbf16>
    %c0_72 = arith.constant 0 : index
    %c0_73 = arith.constant 0 : index
    %207 = vector.load %arg12[%c0_72, %c0_73] : memref<64x32xbf16, #tpu.memory_space<vmem>>, vector<64x32xbf16>
    %cst_74 = arith.constant dense<0.000000e+00> : vector<16x32xf32>
    %208 = tpu.matmul %206, %207, %cst_74 {dimension_numbers = #tpu.dot_dimension_numbers<[1], [0], [0], [1], [0, 0, 1, 1], [], []>} : vector<16x64xbf16>, vector<64x32xbf16>, vector<16x32xf32> -> vector<16x32xf32>
    %c0_75 = arith.constant 0 : index
    %c0_76 = arith.constant 0 : index
    %209 = vector.load %arg13[%c0_75, %c0_76] : memref<1x32xf32, #tpu.memory_space<vmem>>, vector<1x32xf32>
    %210 = vector.broadcast %209 : vector<1x32xf32> to vector<16x32xf32>
    %211 = arith.addf %208, %210 : vector<16x32xf32>
    %212 = arith.addf %134, %211 : vector<16x32xf32>
    %213 = vector.shape_cast %212 : vector<16x32xf32> to vector<2x8x32xf32>
    %c0_77 = arith.constant 0 : index
    %c0_78 = arith.constant 0 : index
    %c0_79 = arith.constant 0 : index
    %214 = vector.load %arg17[%c0_77, %c0_78, %c0_79] : memref<2x8x32xf32, #tpu.memory_space<vmem>>, vector<2x8x32xf32>
    tpu.vector_store %arg17[%c0_77, %c0_78, %c0_79], %213 {strides = array<i32>} : memref<2x8x32xf32, #tpu.memory_space<vmem>>, vector<2x8x32xf32>,
    return
  }
  func.func @transform_0(%arg0: i32) -> (i32, i32, i32) {
    %c0_i32 = arith.constant 0 : i32
    %c0_i32_0 = arith.constant 0 : i32
    %c0_i32_1 = arith.constant 0 : i32
    return %arg0, %c0_i32, %c0_i32_0 : i32, i32, i32
  }
  func.func @transform_1(%arg0: i32) -> (i32, i32) {
    %c0_i32 = arith.constant 0 : i32
    %c0_i32_0 = arith.constant 0 : i32
    %c0_i32_1 = arith.constant 0 : i32
    return %c0_i32, %c0_i32_0 : i32, i32
  }
  func.func @transform_2(%arg0: i32) -> (i32, i32) {
    %c0_i32 = arith.constant 0 : i32
    %c0_i32_0 = arith.constant 0 : i32
    %c0_i32_1 = arith.constant 0 : i32
    return %c0_i32, %c0_i32_0 : i32, i32
  }
  func.func @transform_3(%arg0: i32) -> (i32, i32) {
    %c0_i32 = arith.constant 0 : i32
    %c0_i32_0 = arith.constant 0 : i32
    %c0_i32_1 = arith.constant 0 : i32
    return %c0_i32, %c0_i32_0 : i32, i32
  }
  func.func @transform_4(%arg0: i32) -> (i32, i32) {
    %c0_i32 = arith.constant 0 : i32
    %c0_i32_0 = arith.constant 0 : i32
    %c0_i32_1 = arith.constant 0 : i32
    return %c0_i32, %c0_i32_0 : i32, i32
  }
  func.func @transform_5(%arg0: i32) -> (i32, i32) {
    %c0_i32 = arith.constant 0 : i32
    %c0_i32_0 = arith.constant 0 : i32
    %c0_i32_1 = arith.constant 0 : i32
    return %c0_i32, %c0_i32_0 : i32, i32
  }
  func.func @transform_6(%arg0: i32) -> (i32, i32) {
    %c0_i32 = arith.constant 0 : i32
    %c0_i32_0 = arith.constant 0 : i32
    %c0_i32_1 = arith.constant 0 : i32
    return %c0_i32, %c0_i32_0 : i32, i32
  }
  func.func @transform_7(%arg0: i32) -> (i32, i32) {
    %c0_i32 = arith.constant 0 : i32
    %c0_i32_0 = arith.constant 0 : i32
    %c0_i32_1 = arith.constant 0 : i32
    return %c0_i32, %c0_i32_0 : i32, i32
  }
  func.func @transform_8(%arg0: i32) -> (i32, i32) {
    %c0_i32 = arith.constant 0 : i32
    %c0_i32_0 = arith.constant 0 : i32
    %c0_i32_1 = arith.constant 0 : i32
    return %c0_i32, %c0_i32_0 : i32, i32
  }
  func.func @transform_9(%arg0: i32) -> (i32, i32) {
    %c0_i32 = arith.constant 0 : i32
    %c0_i32_0 = arith.constant 0 : i32
    %c0_i32_1 = arith.constant 0 : i32
    return %c0_i32, %c0_i32_0 : i32, i32
  }
  func.func @transform_10(%arg0: i32) -> (i32, i32) {
    %c0_i32 = arith.constant 0 : i32
    %c0_i32_0 = arith.constant 0 : i32
    %c0_i32_1 = arith.constant 0 : i32
    return %c0_i32, %c0_i32_0 : i32, i32
  }
  func.func @transform_11(%arg0: i32) -> (i32, i32) {
    %c0_i32 = arith.constant 0 : i32
    %c0_i32_0 = arith.constant 0 : i32
    %c0_i32_1 = arith.constant 0 : i32
    return %c0_i32, %c0_i32_0 : i32, i32
  }
  func.func @transform_12(%arg0: i32) -> (i32, i32) {
    %c0_i32 = arith.constant 0 : i32
    %c0_i32_0 = arith.constant 0 : i32
    %c0_i32_1 = arith.constant 0 : i32
    return %c0_i32, %c0_i32_0 : i32, i32
  }
  func.func @transform_13(%arg0: i32) -> (i32, i32) {
    %c0_i32 = arith.constant 0 : i32
    %c0_i32_0 = arith.constant 0 : i32
    %c0_i32_1 = arith.constant 0 : i32
    return %c0_i32, %c0_i32_0 : i32, i32
  }
  func.func @transform_14(%arg0: i32) -> (i32, i32) {
    %c0_i32 = arith.constant 0 : i32
    %c0_i32_0 = arith.constant 0 : i32
    %c0_i32_1 = arith.constant 0 : i32
    return %c0_i32, %c0_i32_0 : i32, i32
  }
  func.func @transform_15(%arg0: i32) -> (i32, i32) {
    %c0_i32 = arith.constant 0 : i32
    %c0_i32_0 = arith.constant 0 : i32
    %c0_i32_1 = arith.constant 0 : i32
    return %c0_i32, %c0_i32_0 : i32, i32
  }
  func.func @transform_16(%arg0: i32) -> (i32, i32, i32) {
    %c0_i32 = arith.constant 0 : i32
    %c0_i32_0 = arith.constant 0 : i32
    %c0_i32_1 = arith.constant 0 : i32
    return %arg0, %c0_i32, %c0_i32_0 : i32, i32, i32
  }
}

</mosaic_0001>

<bundles_post_ra>
// kernel: tpu_custom_call.1
= control target key start
LH: loop header
LB: loop body
LE: loop exit
PB: predicated region body
PF: predicated region fallthrough
CT: control target
= control target key end

     0   :  { %s2765_s0 = inlined_call_operand.vmem [shape: f32[2,8,32], index: 0, kind: input, shape index: {}]   ;;  %s2766_s1 = inlined_call_operand.vmem [shape: bf16[32,96], index: 1, kind: input, shape index: {}]   ;;  %s2767_s2 = inlined_call_operand.vmem [shape: f32[1,96], index: 2, kind: input, shape index: {}]   ;;  %s2768_s3 = inlined_call_operand.vmem [shape: bf16[32,32], index: 3, kind: input, shape index: {}]   ;;  %s2769_s4 = inlined_call_operand.hbm [shape: f32[1,32], index: 4, kind: input, shape index: {}]   ;;  %s2770_s5 = inlined_call_operand.hbm [shape: f32[1,32], index: 5, kind: input, shape index: {}]   ;;  %s2771_s6 = inlined_call_operand.hbm [shape: f32[1,32], index: 6, kind: input, shape index: {}]   ;;  %s2772_s7 = inlined_call_operand.hbm [shape: f32[1,32], index: 7, kind: input, shape index: {}]   ;;  %s2773_s8 = inlined_call_operand.hbm [shape: f32[1,32], index: 8, kind: input, shape index: {}]   ;;  %s2774_s9 = inlined_call_operand.vmem [shape: bf16[32,64], index: 9, kind: input, shape index: {}]   ;;  %s2775_s10 = inlined_call_operand.hbm [shape: f32[1,64], index: 10, kind: input, shape index: {}]   ;;  %s2776_s11 = inlined_call_operand.vmem [shape: bf16[64,32], index: 11, kind: input, shape index: {}]   ;;  %s2777_s12 = inlined_call_operand.hbm [shape: f32[1,32], index: 12, kind: input, shape index: {}]   ;;  %s2778_s13 = inlined_call_operand.vmem [shape: f32[16,32], index: 13, kind: input, shape index: {}]   ;;  %s2779_s14 = inlined_call_operand.hbm [shape: f32[16,32], index: 14, kind: input, shape index: {}]   ;;  %s2780_s15 = inlined_call_operand.hbm [shape: f32[16,32], index: 15, kind: input, shape index: {}]   ;;  %s2781_s16 = inlined_call_operand.hbm [shape: f32[2,8,32], index: 16, kind: output, shape index: {}]  }
   0x1   :  { %2783 = sst [smem:[#allocation24_spill]] %s2765_s0 }
   0x2   :  { %21 = vsyncpa [#allocation3], 0 }
   0x3   :  { %22 = vsyncpa [#allocation6], 0 }
   0x4   :  { %23 = vsyncpa [#allocation9], 0 }
   0x5   :  { %24 = vsyncpa [#allocation12], 0 }
   0x6   :  { %25 = vsyncpa [#allocation15], 0 }
   0x7   :  { %26 = vsyncpa [#allocation4], 0  ;;  %s2221_s21 = smov [#allocation5]   ;;  %s2222_s23 = smov [#allocation8]  }
   0x8   :  { %s51_s22 = sshll.u32 %s2221_s21, 4  ;;  %s71_s24 = sshll.u32 %s2222_s23, 4  ;;  %s52_s22 = int_to_ptr.vmem [resolvable:$true] %s51_s22  ;;  %s72_s24 = int_to_ptr.vmem [resolvable:$true] %s71_s24 }
   0x9   :  { %s1989_s27 = scalar_lea.hbm %s2770_s5, 16 }
   0xa   :  { %p1990_p0 = scmp.ne.s32.totalorder %s2770_s5, %s1989_s27  ;;  %p1993_p1 = scmp.lt.u32.totalorder %s1989_s27, %s2770_s5 }
   0xc   :  { %p1995_p2 = pnand %p1993_p1, %p1990_p0 }
   0xe   :  { %1998 = shalt.err (!%p1995_p2)
}
   0xf   :  { %s1999_s17 = scalar_lea.vmem %s52_s22, 16  ;;  %s2003_s18 = scalar_lea.vmem %s52_s22, 32 }
  0x10   :  { %p2000_p3 = scmp.ne.s32.totalorder %s52_s22, %s1999_s17  ;;  %p2004_p4 = scmp.lt.s32.totalorder %s52_s22, %s52_s22 }
  0x11   :  { %p2005_p5 = scmp.lt.s32.totalorder %s2003_s18, %s1999_s17 }
  0x13   :  { %p2006_p6 = por %p2005_p5, %p2004_p4 }
  0x15   :  { %p2007_p7 = pnand %p2006_p6, %p2000_p3 }
  0x17   :  { %2010 = shalt.err (!%p2007_p7)
}
  0x18   :  { %54 = dma.hbm_to_vmem [thread:$0]  %s2770_s5, 16, %s52_s22, [#allocation6]  }
  0x19   :  { %s2011_s25 = scalar_lea.hbm %s2772_s7, 16 }
  0x1a   :  { %p2012_p8 = scmp.ne.s32.totalorder %s2772_s7, %s2011_s25  ;;  %p2015_p9 = scmp.lt.u32.totalorder %s2011_s25, %s2772_s7 }
  0x1c   :  { %p2017_p10 = pnand %p2015_p9, %p2012_p8 }
  0x1e   :  { %2020 = shalt.err (!%p2017_p10)
}
  0x1f   :  { %s2021_s30 = scalar_lea.vmem %s72_s24, 16  ;;  %s2025_s0 = scalar_lea.vmem %s72_s24, 32 }
  0x20   :  { %p2022_p11 = scmp.ne.s32.totalorder %s72_s24, %s2021_s30  ;;  %p2026_p12 = scmp.lt.s32.totalorder %s72_s24, %s72_s24 }
  0x21   :  { %p2027_p13 = scmp.lt.s32.totalorder %s2025_s0, %s2021_s30 }
  0x23   :  { %p2028_p0 = por %p2027_p13, %p2026_p12 }
  0x25   :  { %p2029_p1 = pnand %p2028_p0, %p2022_p11 }
  0x27   :  { %2032 = shalt.err (!%p2029_p1)
}
  0x28   :  { %74 = dma.hbm_to_vmem [thread:$0]  %s2772_s7, 16, %s72_s24, [#allocation9]  }
  0x29   :  { %s2223_s17 = smov [#allocation11]   ;;  %s2224_s19 = smov [#allocation14]  }
  0x2a   :  { %s93_s18 = sshll.u32 %s2223_s17, 4  ;;  %s116_s20 = sshll.u32 %s2224_s19, 4  ;;  %s94_s18 = int_to_ptr.vmem [resolvable:$true] %s93_s18  ;;  %s2365_s20 = int_to_ptr.vmem [resolvable:$true] %s116_s20 }
  0x2b   :  { %s2033_s25 = scalar_lea.hbm %s2775_s10, 16 }
  0x2c   :  { %p2034_p2 = scmp.ne.s32.totalorder %s2775_s10, %s2033_s25  ;;  %p2037_p3 = scmp.lt.u32.totalorder %s2033_s25, %s2775_s10 }
  0x2e   :  { %p2039_p4 = pnand %p2037_p3, %p2034_p2 }
  0x30   :  { %2042 = shalt.err (!%p2039_p4)
}
  0x31   :  { %s2043_s7 = scalar_lea.vmem %s94_s18, 16  ;;  %s2047_s24 = scalar_lea.vmem %s94_s18, 32 }
  0x32   :  { %p2044_p5 = scmp.ne.s32.totalorder %s94_s18, %s2043_s7  ;;  %p2048_p6 = scmp.lt.s32.totalorder %s94_s18, %s94_s18 }
  0x33   :  { %p2049_p7 = scmp.lt.s32.totalorder %s2047_s24, %s2043_s7 }
  0x35   :  { %p2050_p8 = por %p2049_p7, %p2048_p6 }
  0x37   :  { %p2051_p9 = pnand %p2050_p8, %p2044_p5 }
  0x39   :  { %2054 = shalt.err (!%p2051_p9)
}
  0x3a   :  { %96 = dma.hbm_to_vmem [thread:$0]  %s2775_s10, 16, %s94_s18, [#allocation12]  }
  0x3b   :  { %s2055_s17 = scalar_lea.hbm %s2779_s14, 256 }
  0x3c   :  { %p2056_p10 = scmp.ne.s32.totalorder %s2779_s14, %s2055_s17  ;;  %p2059_p11 = scmp.lt.u32.totalorder %s2055_s17, %s2779_s14 }
  0x3e   :  { %p2061_p12 = pnand %p2059_p11, %p2056_p10 }
  0x40   :  { %2064 = shalt.err (!%p2061_p12)
}
  0x41   :  { %s2065_s26 = scalar_lea.vmem %s2365_s20, 256  ;;  %p2070_p0 = scmp.lt.s32.totalorder %s2365_s20, %s2365_s20 }
  0x42   :  { %p2066_p13 = scmp.ne.s32.totalorder %s2365_s20, %s2065_s26  ;;  %p2071_p1 = scmp.lt.s32.totalorder %s2065_s26, %s2065_s26 }
  0x44   :  { %p2072_p2 = por %p2071_p1, %p2070_p0 }
  0x46   :  { %p2073_p3 = pnand %p2072_p2, %p2066_p13 }
  0x48   :  { %2076 = shalt.err (!%p2073_p3)
}
  0x49   :  { %s2225_s10 = smov 128   ;;  %s2226_s18 = smov 8  }
  0x4a   :  { %122 = dma.hbm_to_vmem [thread:$0]  %s2779_s14, 256, %s2365_s20, [#allocation15], %s2225_s10, %s2225_s10, %s2226_s18  }
  0x4b   :  { %s2227_s29 = smov [#allocation2]   ;;  %s2228_s24 = smov [#allocation7]  }
  0x4c   :  { %s41_s7 = sshll.u32 %s2227_s29, 4  ;;  %s61_s30 = sshll.u32 %s2228_s24, 4  ;;  %s42_s7 = int_to_ptr.vmem [resolvable:$true] %s41_s7  ;;  %s62_s30 = int_to_ptr.vmem [resolvable:$true] %s61_s30 }
  0x4d   :  { %s2077_s22 = scalar_lea.hbm %s2769_s4, 16 }
  0x4e   :  { %p2078_p4 = scmp.ne.s32.totalorder %s2769_s4, %s2077_s22  ;;  %p2081_p5 = scmp.lt.u32.totalorder %s2077_s22, %s2769_s4 }
  0x50   :  { %p2083_p6 = pnand %p2081_p5, %p2078_p4 }
  0x52   :  { %2086 = shalt.err (!%p2083_p6)
}
  0x53   :  { %s2087_s14 = scalar_lea.vmem %s42_s7, 16  ;;  %s2091_s20 = scalar_lea.vmem %s42_s7, 32 }
  0x54   :  { %p2088_p7 = scmp.ne.s32.totalorder %s42_s7, %s2087_s14  ;;  %p2092_p8 = scmp.lt.s32.totalorder %s42_s7, %s42_s7 }
  0x55   :  { %p2093_p9 = scmp.lt.s32.totalorder %s2091_s20, %s2087_s14 }
  0x57   :  { %p2094_p10 = por %p2093_p9, %p2092_p8 }
  0x59   :  { %p2095_p11 = pnand %p2094_p10, %p2088_p7 }
  0x5b   :  { %2098 = shalt.err (!%p2095_p11)
}
  0x5c   :  { %44 = dma.hbm_to_vmem [thread:$0]  %s2769_s4, 16, %s42_s7, [#allocation3]  }
  0x5d   :  { %s2099_s29 = scalar_lea.hbm %s2771_s6, 16 }
  0x5e   :  { %p2100_p12 = scmp.ne.s32.totalorder %s2771_s6, %s2099_s29  ;;  %p2103_p13 = scmp.lt.u32.totalorder %s2099_s29, %s2771_s6 }
  0x60   :  { %p2105_p0 = pnand %p2103_p13, %p2100_p12 }
  0x62   :  { %2108 = shalt.err (!%p2105_p0)
}
  0x63   :  { %s2109_s17 = scalar_lea.vmem %s62_s30, 16  ;;  %s2113_s19 = scalar_lea.vmem %s62_s30, 32 }
  0x64   :  { %p2110_p1 = scmp.ne.s32.totalorder %s62_s30, %s2109_s17  ;;  %p2114_p2 = scmp.lt.s32.totalorder %s62_s30, %s62_s30 }
  0x65   :  { %p2115_p3 = scmp.lt.s32.totalorder %s2113_s19, %s2109_s17 }
  0x67   :  { %p2116_p4 = por %p2115_p3, %p2114_p2 }
  0x69   :  { %p2117_p5 = pnand %p2116_p4, %p2110_p1 }
  0x6b   :  { %2120 = shalt.err (!%p2117_p5)
}
  0x6c   :  { %64 = dma.hbm_to_vmem [thread:$0]  %s2771_s6, 16, %s62_s30, [#allocation6]  }
  0x6d   :  { %s2229_s21 = smov [#allocation10]   ;;  %s2230_s14 = smov [#allocation13]  }
  0x6e   :  { %s81_s23 = sshll.u32 %s2229_s21, 4  ;;  %s105_s20 = sshll.u32 %s2230_s14, 4  ;;  %s82_s23 = int_to_ptr.vmem [resolvable:$true] %s81_s23  ;;  %s106_s20 = int_to_ptr.vmem [resolvable:$true] %s105_s20 }
  0x6f   :  { %s2121_s27 = scalar_lea.hbm %s2773_s8, 16 }
  0x70   :  { %p2122_p6 = scmp.ne.s32.totalorder %s2773_s8, %s2121_s27  ;;  %p2125_p7 = scmp.lt.u32.totalorder %s2121_s27, %s2773_s8 }
  0x72   :  { %p2127_p8 = pnand %p2125_p7, %p2122_p6 }
  0x74   :  { %2130 = shalt.err (!%p2127_p8)
}
  0x75   :  { %s2131_s6 = scalar_lea.vmem %s82_s23, 16  ;;  %s2135_s30 = scalar_lea.vmem %s82_s23, 32 }
  0x76   :  { %p2132_p9 = scmp.ne.s32.totalorder %s82_s23, %s2131_s6  ;;  %p2136_p10 = scmp.lt.s32.totalorder %s82_s23, %s82_s23 }
  0x77   :  { %p2137_p11 = scmp.lt.s32.totalorder %s2135_s30, %s2131_s6 }
  0x79   :  { %p2138_p12 = por %p2137_p11, %p2136_p10 }
  0x7b   :  { %p2139_p13 = pnand %p2138_p12, %p2132_p9 }
  0x7d   :  { %2142 = shalt.err (!%p2139_p13)
}
  0x7e   :  { %84 = dma.hbm_to_vmem [thread:$0]  %s2773_s8, 16, %s82_s23, [#allocation9]  }
  0x7f   :  { %s2143_s4 = scalar_lea.hbm %s2777_s12, 16 }
  0x80   :  { %p2144_p0 = scmp.ne.s32.totalorder %s2777_s12, %s2143_s4  ;;  %p2147_p1 = scmp.lt.u32.totalorder %s2143_s4, %s2777_s12 }
  0x82   :  { %p2149_p2 = pnand %p2147_p1, %p2144_p0 }
  0x84   :  { %2152 = shalt.err (!%p2149_p2)
}
  0x85   :  { %s2153_s26 = scalar_lea.vmem %s106_s20, 16  ;;  %s2157_s27 = scalar_lea.vmem %s106_s20, 32 }
  0x86   :  { %p2154_p3 = scmp.ne.s32.totalorder %s106_s20, %s2153_s26  ;;  %p2158_p4 = scmp.lt.s32.totalorder %s106_s20, %s106_s20 }
  0x87   :  { %p2159_p5 = scmp.lt.s32.totalorder %s2157_s27, %s2153_s26 }
  0x89   :  { %p2160_p6 = por %p2159_p5, %p2158_p4 }
  0x8b   :  { %p2161_p7 = pnand %p2160_p6, %p2154_p3 }
  0x8d   :  { %2164 = shalt.err (!%p2161_p7)
}
  0x8e   :  { %108 = dma.hbm_to_vmem [thread:$0]  %s2777_s12, 16, %s106_s20, [#allocation12]  }
  0x8f   :  { %s2231_s28 = smov [#allocation16]   ;;  %s2165_s6 = scalar_lea.hbm %s2780_s15, 256 }
  0x90   :  { %s128_s29 = sshll.u32 %s2231_s28, 4  ;;  %p2166_p8 = scmp.ne.s32.totalorder %s2780_s15, %s2165_s6  ;;  %s129_s29 = int_to_ptr.vmem [resolvable:$true] %s128_s29 }
  0x91   :  { %p2169_p9 = scmp.lt.u32.totalorder %s2165_s6, %s2780_s15 }
  0x93   :  { %p2171_p10 = pnand %p2169_p9, %p2166_p8 }
  0x95   :  { %2174 = shalt.err (!%p2171_p10)
}
  0x96   :  { %s2175_s19 = scalar_lea.vmem %s129_s29, 256  ;;  %p2180_p12 = scmp.lt.s32.totalorder %s129_s29, %s129_s29 }
  0x97   :  { %p2176_p11 = scmp.ne.s32.totalorder %s129_s29, %s2175_s19  ;;  %p2181_p13 = scmp.lt.s32.totalorder %s2175_s19, %s2175_s19 }
  0x99   :  { %p2182_p0 = por %p2181_p13, %p2180_p12 }
  0x9b   :  { %p2183_p1 = pnand %p2182_p0, %p2176_p11 }
  0x9d   :  { %2186 = shalt.err (!%p2183_p1)
}
  0x9e   :  { %134 = dma.hbm_to_vmem [thread:$0]  %s2780_s15, 256, %s129_s29, [#allocation15], %s2225_s10, %s2225_s10, %s2226_s18  }
  0x9f   :  { %2209 = dma.done.wait [#allocation3], 16  }
  0xa0   :  { %2210 = vsyncadd [#allocation3], 4294967280 }
  0xa1   :  { %2211 = dma.done.wait [#allocation6], 32  }
  0xa2   :  { %2212 = vsyncadd [#allocation6], 4294967264 }
  0xa3   :  { %2213 = dma.done.wait [#allocation9], 32  }
  0xa4   :  { %2214 = vsyncadd [#allocation9], 4294967264 }
  0xa5   :  { %2215 = dma.done.wait [#allocation12], 32  }
  0xa6   :  { %2216 = vsyncadd [#allocation12], 4294967264 }
  0xa7   :  { %2217 = dma.done.wait [#allocation15], 512  }
  0xa8   :  { %2218 = vsyncadd [#allocation15], 4294966784  ;;  %vm167_vm0 = vcmask 261120   ;;  %s2784_s21 = sld [smem:[#allocation24_spill]]  ;;  %v1929_v14 = vld [vmem:[%s2766_s1] sm:$0xff]   ;;  %v2232_v15 = vmov 0.0  }
  0xa9   :  { %1747 = vmatprep.subr.bf16.mxu0 %v2232_v15  ;;  %1755 = vmatprep.subr.bf16.mxu1 %v2232_v15  ;;  %v1930_v16 = vld [vmem:[%s2766_s1 + $0x8] sm:$0xff]   ;;  %vm2233_vm1 = vmmov 0   ;;  %v1651_v25 = vld [vmem:[#allocation5] ss:$0 sm:$0xff]  ;;  %v1652_v29 = vld [vmem:[#allocation7] ss:$0 sm:$0xff] }
  0xaa   :  { %1748 = vmatpush3.bf16.msra.mxu0 %v1929_v14  ;;  %1751 = vmatprep.mubr.msk.bf16.mxu0 %vm2233_vm1, %v2232_v15  ;;  %v1653_v34 = vld [vmem:[%s2767_s2] ss:$0 sm:$0xff]  ;;  %s2234_s28 = smov 95   ;;  %s2235_s29 = smov 127   ;;  %v2514_v42 = vld [vmem:[%s2778_s13 + $0x8] sm:$0xff]  ;;  %vm301_vm2 = vcmask 252928  }
  0xab   :  { %1749 = vmatprep.subr.bf16.mxu0 %v2232_v15  ;;  %1757 = vmatprep.mubr.msk.bf16.mxu1 %vm2233_vm1, %v2232_v15  ;;  %s2236_s24 = smov 97   ;;  %s2237_s2 = smov 65   ;;  %v2505_v41 = vld [vmem:[%s2778_s13] sm:$0xff]  ;;  %v281_v43 = vld [vmem:[#allocation14] sm:$0xff]  ;;  %vm320_vm3 = vcmask 7168   ;;  %v282_v51 = vld [vmem:[#allocation14 + $0x8] sm:$0xff] }
  0xac   :  { %s2238_s30 = smov 32   ;;  %v283_v50 = vld [vmem:[#allocation16] sm:$0xff]  ;;  %v284_v59 = vld [vmem:[#allocation16 + $0x8] sm:$0xff]  ;;  %s2239_s13 = smov 31   ;;  %vm394_vm4 = vcmask 64512   ;;  %vm520_vm5 = vcmask 1043456  }
  0xad   :  { %s2240_s17 = smov 96   ;;  %s2241_s19 = smov 1   ;;  %vm1299_vm6 = vcmask 130048   ;;  %vm1302_vm7 = vcmask 195584   ;;  %vm1581_vm10 = vcmask 523264  }
  0xae   :  { %v163_v0 = vld [vmem:[%s2784_s21] sm:$0xff]  ;;  %v164_v1 = vld [vmem:[%s2784_s21 + $0x8] sm:$0xff]  ;;  %1750 = vmatpush3.bf16.msra.mxu0 %v1930_v16  ;;  %s2242_s12 = smov 64   ;;  %s2243_s20 = smov 88  }
  0xaf   :  { %v168_v2 = vsel %vm167_vm0, %v163_v0, 0.0  ;;  %v171_v3 = vsel %vm167_vm0, %v164_v1, 0.0  ;;  %1761 = vmatprep.subr.bf16.mxu0 %v2232_v15  ;;  %s2244_s4 = smov 120   ;;  %s2245_s7 = smov 56  }
  0xb0   :  { %169 = vadd.xlane.f32.xlu0 %v168_v2  ;;  %s2246_s14 = smov 80   ;;  %s2247_s25 = smov 112  }
  0xb1   :  { %s2248_s15 = smov 48   ;;  %s2249_s26 = smov 72  }
  0xb2   :  { %s2250_s27 = smov 104   ;;  %s2251_s8 = smov 40  }
  0xb3   :  { %s2252_s1 = smov 16  }
  0xb4   :  { %172 = vadd.xlane.f32.xlu0 %v171_v3 }
 0x13d   :  { %v170_v4 = vpop.xlane.xlu0 %169 }
 0x13e   :  { %v175_v5 = vmul.f32 0.03125, %v170_v4 }
 0x140   :  { %v177_v6 = vsub.f32 %v163_v0, %v175_v5 }
 0x141   :  { %v173_v7 = vpop.xlane.xlu0 %172 }
 0x142   :  { %v176_v8 = vmul.f32 0.03125, %v173_v7  ;;  %v179_v9 = vmul.f32 %v177_v6, %v177_v6 }
 0x144   :  { %v178_v10 = vsub.f32 %v164_v1, %v176_v8  ;;  %v181_v11 = vsel %vm167_vm0, %v179_v9, 0.0 }
 0x145   :  { %182 = vadd.xlane.f32.xlu1 %v181_v11 }
 0x146   :  { %v180_v12 = vmul.f32 %v178_v10, %v178_v10 }
 0x148   :  { %v184_v13 = vsel %vm167_vm0, %v180_v12, 0.0 }
 0x149   :  { %185 = vadd.xlane.f32.xlu1 %v184_v13 }
 0x1d2   :  { %v183_v17 = vpop.xlane.xlu1 %182 }
 0x1d3   :  { %v187_v18 = vmul.f32 0.03125, %v183_v17 }
 0x1d5   :  { %v189_v19 = vadd.f32 1e-05, %v187_v18 }
 0x1d6   :  { %v186_v20 = vpop.xlane.xlu1 %185 }
 0x1d7   :  { %1939 = vrsqrt.f32 %v189_v19  ;;  %v188_v21 = vmul.f32 0.03125, %v186_v20 }
 0x1d9   :  { %v190_v22 = vadd.f32 1e-05, %v188_v21 }
 0x1db   :  { %1941 = vrsqrt.f32 %v190_v22 }
 0x1e1   :  { %v1940_v23 = vpop.eup %1939 }
 0x1e2   :  { %v193_v24 = vmul.f32 %v1940_v23, %v177_v6 }
 0x1e4   :  { %v201_v28 = vmul.f32 %v1651_v25, %v193_v24 }
 0x1e5   :  { %v1942_v26 = vpop.eup %1941 }
 0x1e6   :  { %v194_v27 = vmul.f32 %v1942_v26, %v178_v10  ;;  %v209_v31 = vadd.f32 %v1652_v29, %v201_v28 }
 0x1e8   :  { %v202_v30 = vmul.f32 %v1651_v25, %v194_v27 }
 0x1ea   :  { %v210_v32 = vadd.f32 %v1652_v29, %v202_v30 }
 0x1ec   :  { %v211_v33 = vpack.c.bf16 %v210_v32, %v209_v31 }
 0x1ee   :  { %1752 = vmatmul.mubr.msk.bf16.vlgmr.msra.gmra.mrb[0].mxu0 %vm167_vm0, %v211_v33 }
 0x1ef   :  { %1763 = vmatprep.mubr.msk.bf16.mxu0 %vm2233_vm1, %v2232_v15 }
 0x2c1   :  { %v272_v35 = vpop.f32.mrb[0].mxu0 }
 0x2c2   :  { %v2492_v36 = vadd.f32 %v1653_v34, %v272_v35  ;;  %v1753_v37 = vpop.f32.mrb[1].mxu0 }
 0x2c3   :  { %v275_v38 = vpop.f32.mrb[2].mxu0 }
 0x2c4   :  { %343 = vrot.lane.b32.xlu1 %v2492_v36, %s2234_s28  ;;  %289 = vrot.lane.b32.xlu0 %v2492_v36, %s2235_s29  ;;  %v1754_v39 = vpop.f32.mrb[3].mxu0  ;;  %v2496_v40 = vadd.f32 %v1653_v34, %v275_v38  ;;  %v285_v19 = vmul.f32 %v2505_v41, %v2492_v36 }
 0x2c6   :  { %v286_v31 = vmul.f32 %v2514_v42, %v2496_v40 }
 0x2c8   :  { %308 = vrot.lane.b32.xlu0 %v2492_v36, %s2236_s24  ;;  %291 = vrot.lane.b32.xlu1 %v2496_v40, %s2235_s29 }
 0x2cc   :  { %363 = vrot.lane.b32.xlu0 %v2492_v36, %s2237_s2  ;;  %345 = vrot.lane.b32.xlu1 %v2496_v40, %s2234_s28 }
 0x2d0   :  { %335 = vrot.lane.b32.xlu0 %v2505_v41, %s2238_s30  ;;  %310 = vrot.lane.b32.xlu1 %v2496_v40, %s2236_s24 }
 0x2d4   :  { %365 = vrot.lane.b32.xlu1 %v2496_v40, %s2237_s2  ;;  %s2253_s2 = smov 24  }
 0x2d8   :  { %337 = vrot.lane.b32.xlu1 %v2514_v42, %s2238_s30 }
 0x336   :  { %v344_v44 = vpop.permute.xlu1 %343  ;;  %v290_v45 = vpop.permute.xlu0 %289 }
 0x337   :  { %v349_v46 = vsel %vm301_vm2, %v344_v44, %v290_v45 }
 0x338   :  { %v351_v47 = vmul.f32 %v349_v46, %v281_v43 }
 0x33a   :  { %355 = vrot.lane.b32.xlu0 %v351_v47, %s2238_s30  ;;  %v309_v48 = vpop.permute.xlu0 %308  ;;  %v292_v49 = vpop.permute.xlu1 %291 }
 0x33e   :  { %v364_v52 = vpop.permute.xlu0 %363  ;;  %v346_v53 = vpop.permute.xlu1 %345 }
 0x33f   :  { %v369_v54 = vsel %vm320_vm3, %v364_v52, %v309_v48  ;;  %v350_v55 = vsel %vm301_vm2, %v346_v53, %v292_v49 }
 0x340   :  { %v371_v56 = vmul.f32 %v369_v54, %v283_v50  ;;  %v352_v57 = vmul.f32 %v350_v55, %v282_v51 }
 0x342   :  { %375 = vrot.lane.b32.xlu0 %v371_v56, %s2238_s30  ;;  %357 = vrot.lane.b32.xlu1 %v352_v57, %s2238_s30  ;;  %v311_v58 = vpop.permute.xlu1 %310  ;;  %v336_v63 = vpop.permute.xlu0 %335 }
 0x343   :  { %v341_v1 = vmul.f32 %v336_v63, %v2492_v36 }
 0x346   :  { %295 = vrot.lane.b32.xlu0 %v2492_v36, %s2239_s13  ;;  %v366_v60 = vpop.permute.xlu1 %365 }
 0x347   :  { %v370_v61 = vsel %vm320_vm3, %v366_v60, %v311_v58 }
 0x348   :  { %v372_v62 = vmul.f32 %v370_v61, %v284_v59 }
 0x34a   :  { %377 = vrot.lane.b32.xlu1 %v372_v62, %s2238_s30  ;;  %v338_v3 = vpop.permute.xlu1 %337  ;;  %v2578_v62 = vpack.c.bf16 %v2492_v36, %v2492_v36 }
 0x34b   :  { %v342_v8 = vmul.f32 %v338_v3, %v2496_v40 }
 0x34e   :  { %297 = vrot.lane.b32.xlu1 %v2496_v40, %s2239_s13 }
 0x3ac   :  { %v356_v0 = vpop.permute.xlu0 %355 }
 0x3ad   :  { %v361_v2 = vadd.f32 %v356_v0, %v341_v1 }
 0x3b4   :  { %v376_v4 = vpop.permute.xlu0 %375  ;;  %v358_v7 = vpop.permute.xlu1 %357 }
 0x3b5   :  { %v381_v5 = vadd.f32 %v376_v4, %v361_v2  ;;  %v362_v9 = vadd.f32 %v358_v7, %v342_v8 }
 0x3b7   :  { %v2529_v6 = vpack.c.bf16 %v381_v5, %v381_v5 }
 0x3b8   :  { %v296_v13 = vpop.permute.xlu0 %295 }
 0x3b9   :  { %392 = vrot.lane.b32.xlu0 %v2529_v6, %s2240_s17  ;;  %v302_v14 = vsel %vm301_vm2, %v290_v45, %v296_v13 }
 0x3ba   :  { %v304_v18 = vmul.f32 %v302_v14, %v281_v43 }
 0x3bc   :  { %v378_v10 = vpop.permute.xlu1 %377  ;;  %v306_v23 = vadd.f32 %v304_v18, %v285_v19 }
 0x3bd   :  { %v382_v11 = vadd.f32 %v378_v10, %v362_v9  ;;  %314 = vrot.lane.b32.xlu0 %v2492_v36, %s2241_s19 }
 0x3bf   :  { %v2534_v12 = vpack.c.bf16 %v382_v11, %v382_v11 }
 0x3c0   :  { %v298_v20 = vpop.permute.xlu1 %297 }
 0x3c1   :  { %442 = vrot.lane.b32.xlu1 %v2534_v12, %s2240_s17  ;;  %v303_v25 = vsel %vm301_vm2, %v292_v49, %v298_v20 }
 0x3c2   :  { %v305_v29 = vmul.f32 %v303_v25, %v282_v51 }
 0x3c4   :  { %v307_v34 = vadd.f32 %v305_v29, %v286_v31 }
 0x3c5   :  { %316 = vrot.lane.b32.xlu1 %v2496_v40, %s2241_s19 }
 0x42b   :  { %v393_v16 = vpop.permute.xlu0 %392 }
 0x42c   :  { %v399_v17 = vsel %vm394_vm4, %v393_v16, 0 }
 0x42d   :  { %1756 = vmatpush3.bf16.xpose.msra.mxu1 %v399_v17 }
 0x42e   :  { %1767 = vmatprep.subr.bf16.mxu1 %v2232_v15 }
 0x42f   :  { %v315_v21 = vpop.permute.xlu0 %314 }
 0x430   :  { %v321_v22 = vsel %vm320_vm3, %v309_v48, %v315_v21 }
 0x431   :  { %v323_v24 = vmul.f32 %v321_v22, %v283_v50  ;;  %v2566_v50 = vpack.c.bf16 %v2496_v40, %v2496_v40 }
 0x433   :  { %v325_v26 = vadd.f32 %v323_v24, %v306_v23  ;;  %v443_v27 = vpop.permute.xlu1 %442 }
 0x434   :  { %v448_v28 = vsel %vm394_vm4, %v443_v27, 0 }
 0x435   :  { %v2546_v30 = vpack.c.bf16 %v325_v26, %v325_v26  ;;  %1762 = vmatpush3.bf16.xpose.msra.mxu0 %v448_v28 }
 0x436   :  { %1773 = vmatprep.subr.bf16.mxu0 %v2232_v15 }
 0x437   :  { %1758 = vmatmul.mubr.msk.bf16.vlgmr.msra.gmra.mrb[0].mxu1 %vm394_vm4, %v2546_v30  ;;  %v317_v32 = vpop.permute.xlu1 %316 }
 0x438   :  { %v322_v33 = vsel %vm320_vm3, %v311_v58, %v317_v32  ;;  %1769 = vmatprep.mubr.msk.bf16.mxu1 %vm2233_vm1, %v2232_v15 }
 0x439   :  { %v324_v35 = vmul.f32 %v322_v33, %v284_v59 }
 0x43b   :  { %v326_v37 = vadd.f32 %v324_v35, %v307_v34 }
 0x43d   :  { %v2556_v38 = vpack.c.bf16 %v326_v37, %v326_v37 }
 0x43f   :  { %1764 = vmatmul.mubr.msk.bf16.vlgmr.msra.gmra.mrb[4].mxu0 %vm394_vm4, %v2556_v38 }
 0x440   :  { %1775 = vmatprep.mubr.msk.bf16.mxu0 %vm2233_vm1, %v2232_v15 }
 0x50a   :  { %v435_v39 = vpop.f32.mrb[0].mxu1 }
 0x50b   :  { %v1759_v41 = vpop.f32.mrb[1].mxu1  ;;  %v490_v42 = vsel %vm394_vm4, %v435_v39, -inf }
 0x50c   :  { %491 = vmax.xlane.f32.xlu0 %v490_v42  ;;  %v438_v43 = vpop.f32.mrb[2].mxu1 }
 0x50d   :  { %v1760_v44 = vpop.f32.mrb[3].mxu1 }
 0x512   :  { %v484_v45 = vpop.f32.mrb[4].mxu0 }
 0x513   :  { %v1765_v46 = vpop.f32.mrb[5].mxu0  ;;  %v493_v47 = vsel %vm394_vm4, %v484_v45, -inf }
 0x514   :  { %494 = vmax.xlane.f32.xlu1 %v493_v47  ;;  %v487_v48 = vpop.f32.mrb[6].mxu0 }
 0x515   :  { %v1766_v49 = vpop.f32.mrb[7].mxu0 }
 0x525   :  { %565 = vrot.lane.b32.xlu1 %v2566_v50, %s2242_s12 }
 0x529   :  { %615 = vrot.lane.b32.xlu1 %v2529_v6, %s2243_s20 }
 0x52d   :  { %665 = vrot.lane.b32.xlu1 %v2534_v12, %s2243_s20 }
 0x531   :  { %663 = vrot.lane.b32.xlu1 %v2556_v38, %s2244_s4 }
 0x599   :  { %v492_v51 = vpop.xlane.xlu0 %491 }
 0x59a   :  { %v496_v52 = vsub.f32 %v435_v39, %v492_v51 }
 0x59c   :  { %v498_v53 = vmul.f32 1.442695, %v496_v52 }
 0x59e   :  { %1943 = vpow2.f32 %v498_v53 }
 0x5a1   :  { %v495_v54 = vpop.xlane.xlu1 %494 }
 0x5a2   :  { %v497_v55 = vsub.f32 %v484_v45, %v495_v54 }
 0x5a4   :  { %v500_v40 = vmul.f32 1.442695, %v497_v55 }
 0x5a5   :  { %v566_v56 = vpop.permute.xlu1 %565 }
 0x5a6   :  { %1945 = vpow2.f32 %v500_v40  ;;  %v571_v57 = vsel %vm520_vm5, %v566_v56, 0 }
 0x5a7   :  { %1774 = vmatpush3.bf16.msra.mxu0 %v571_v57 }
 0x5a8   :  { %v1944_v58 = vpop.eup %1943  ;;  %1785 = vmatprep.subr.bf16.mxu0 %v2232_v15 }
 0x5a9   :  { %v502_v59 = vsel %vm394_vm4, %v1944_v58, 0.0  ;;  %v616_v7 = vpop.permute.xlu1 %615 }
 0x5aa   :  { %503 = vadd.xlane.f32.xlu0 %v502_v59  ;;  %v621_v10 = vsel %vm394_vm4, %v616_v7, 0 }
 0x5ad   :  { %v666_v9 = vpop.permute.xlu1 %665 }
 0x5ae   :  { %v671_v13 = vsel %vm394_vm4, %v666_v9, 0 }
 0x5b0   :  { %v1946_v60 = vpop.eup %1945 }
 0x5b1   :  { %v505_v61 = vsel %vm394_vm4, %v1946_v60, 0.0  ;;  %v664_v16 = vpop.permute.xlu1 %663 }
 0x5b2   :  { %506 = vadd.xlane.f32.xlu0 %v505_v61 }
 0x5c8   :  { %515 = vrot.lane.b32.xlu0 %v2578_v62, %s2242_s12 }
 0x5cc   :  { %613 = vrot.lane.b32.xlu0 %v2546_v30, %s2244_s4 }
 0x637   :  { %v504_v63 = vpop.xlane.xlu0 %503 }
 0x638   :  { %1947 = vrcp.f32 %v504_v63 }
 0x63f   :  { %v507_v0 = vpop.xlane.xlu0 %506 }
 0x640   :  { %1949 = vrcp.f32 %v507_v0 }
 0x642   :  { %v1948_v1 = vpop.eup %1947 }
 0x643   :  { %v509_v2 = vmul.f32 %v1948_v1, %v1944_v58  ;;  %v516_v3 = vpop.permute.xlu0 %515 }
 0x644   :  { %v522_v4 = vsel %vm520_vm5, %v516_v3, 0 }
 0x645   :  { %1768 = vmatpush3.bf16.msra.mxu1 %v522_v4  ;;  %v512_v5 = vpack.c.bf16 %v509_v2, %v509_v2 }
 0x646   :  { %1779 = vmatprep.subr.bf16.mxu1 %v2232_v15 }
 0x647   :  { %v614_v14 = vpop.permute.xlu0 %613 }
 0x648   :  { %1770 = vmatmul.mubr.msk.bf16.vlgmr.msra.gmra.mrb[4].mxu1 %vm394_vm4, %v512_v5 }
 0x649   :  { %1781 = vmatprep.mubr.msk.bf16.mxu1 %vm2233_vm1, %v2232_v15 }
 0x64a   :  { %v1950_v36 = vpop.eup %1949 }
 0x64b   :  { %v511_v8 = vmul.f32 %v1950_v36, %v1946_v60 }
 0x64d   :  { %v513_v11 = vpack.c.bf16 %v511_v8, %v511_v8 }
 0x64e   :  { %1780 = vmatpush3.bf16.xpose.msra.mxu1 %v621_v10 }
 0x64f   :  { %1776 = vmatmul.mubr.msk.bf16.vlgmr.msra.gmra.mrb[8].mxu0 %vm394_vm4, %v513_v11  ;;  %1791 = vmatprep.subr.bf16.mxu1 %v2232_v15 }
 0x650   :  { %1786 = vmatpush3.bf16.xpose.msra.mxu0 %v671_v13  ;;  %1787 = vmatprep.mubr.msk.bf16.mxu0 %vm2233_vm1, %v2232_v15 }
 0x651   :  { %1797 = vmatprep.subr.bf16.mxu0 %v2232_v15 }
 0x655   :  { %1782 = vmatmul.mubr.msk.bf16.vlgmr.msra.gmra.mrb[8].mxu1 %vm394_vm4, %v614_v14 }
 0x656   :  { %1793 = vmatprep.mubr.msk.bf16.mxu1 %vm2233_vm1, %v2232_v15 }
 0x657   :  { %1788 = vmatmul.mubr.msk.bf16.vlgmr.msra.gmra.mrb[12].mxu0 %vm394_vm4, %v664_v16 }
 0x658   :  { %1799 = vmatprep.mubr.msk.bf16.mxu0 %vm2233_vm1, %v2232_v15 }
 0x71b   :  { %v2600_v17 = vpop.f32.mrb[4].mxu1 }
 0x71c   :  { %v1771_v18 = vpop.f32.mrb[5].mxu1 }
 0x71d   :  { %v561_v19 = vpop.f32.mrb[6].mxu1 }
 0x71e   :  { %v1772_v20 = vpop.f32.mrb[7].mxu1 }
 0x722   :  { %v2602_v21 = vpop.f32.mrb[8].mxu0 }
 0x723   :  { %v1777_v22 = vpop.f32.mrb[9].mxu0 }
 0x724   :  { %v610_v23 = vpop.f32.mrb[10].mxu0 }
 0x725   :  { %v1778_v24 = vpop.f32.mrb[11].mxu0 }
 0x728   :  { %v657_v25 = vpop.f32.mrb[8].mxu1 }
 0x729   :  { %v1783_v26 = vpop.f32.mrb[9].mxu1  ;;  %v713_v27 = vsel %vm394_vm4, %v657_v25, -inf }
 0x72a   :  { %714 = vmax.xlane.f32.xlu0 %v713_v27  ;;  %v660_v28 = vpop.f32.mrb[10].mxu1  ;;  %v707_v29 = vpop.f32.mrb[12].mxu0 }
 0x72b   :  { %v1784_v31 = vpop.f32.mrb[11].mxu1  ;;  %v1789_v32 = vpop.f32.mrb[13].mxu0  ;;  %v716_v33 = vsel %vm394_vm4, %v707_v29, -inf }
 0x72c   :  { %717 = vmax.xlane.f32.xlu1 %v716_v33  ;;  %v710_v34 = vpop.f32.mrb[14].mxu0 }
 0x72d   :  { %v1790_v35 = vpop.f32.mrb[15].mxu0 }
 0x73d   :  { %785 = vrot.lane.b32.xlu1 %v2566_v50, %s2245_s7 }
 0x741   :  { %835 = vrot.lane.b32.xlu1 %v2529_v6, %s2246_s14 }
 0x745   :  { %885 = vrot.lane.b32.xlu1 %v2534_v12, %s2246_s14 }
 0x749   :  { %883 = vrot.lane.b32.xlu1 %v2556_v38, %s2247_s25 }
 0x7b7   :  { %v715_v37 = vpop.xlane.xlu0 %714 }
 0x7b8   :  { %v719_v39 = vsub.f32 %v657_v25, %v715_v37 }
 0x7b9   :  { %v718_v41 = vpop.xlane.xlu1 %717 }
 0x7ba   :  { %v721_v42 = vmul.f32 1.442695, %v719_v39  ;;  %v720_v43 = vsub.f32 %v707_v29, %v718_v41 }
 0x7bc   :  { %1951 = vpow2.f32 %v721_v42  ;;  %v723_v44 = vmul.f32 1.442695, %v720_v43 }
 0x7bd   :  { %v786_v45 = vpop.permute.xlu1 %785 }
 0x7be   :  { %1953 = vpow2.f32 %v723_v44  ;;  %v791_v46 = vsel %vm520_vm5, %v786_v45, 0 }
 0x7bf   :  { %1798 = vmatpush3.bf16.msra.mxu0 %v791_v46 }
 0x7c0   :  { %1809 = vmatprep.subr.bf16.mxu0 %v2232_v15 }
 0x7c1   :  { %v836_v56 = vpop.permute.xlu1 %835 }
 0x7c2   :  { %v841_v63 = vsel %vm394_vm4, %v836_v56, 0 }
 0x7c5   :  { %v886_v61 = vpop.permute.xlu1 %885 }
 0x7c6   :  { %v1952_v47 = vpop.eup %1951  ;;  %v891_v1 = vsel %vm394_vm4, %v886_v61, 0 }
 0x7c7   :  { %v725_v48 = vsel %vm394_vm4, %v1952_v47, 0.0 }
 0x7c8   :  { %v1954_v49 = vpop.eup %1953  ;;  %726 = vadd.xlane.f32.xlu0 %v725_v48 }
 0x7c9   :  { %v728_v51 = vsel %vm394_vm4, %v1954_v49, 0.0  ;;  %v884_v3 = vpop.permute.xlu1 %883 }
 0x7cc   :  { %729 = vadd.xlane.f32.xlu0 %v728_v51 }
 0x7e2   :  { %737 = vrot.lane.b32.xlu0 %v2578_v62, %s2245_s7 }
 0x7e6   :  { %833 = vrot.lane.b32.xlu0 %v2546_v30, %s2247_s25 }
 0x855   :  { %v727_v52 = vpop.xlane.xlu0 %726 }
 0x856   :  { %1955 = vrcp.f32 %v727_v52 }
 0x859   :  { %v730_v53 = vpop.xlane.xlu0 %729 }
 0x85a   :  { %1957 = vrcp.f32 %v730_v53 }
 0x85d   :  { %v738_v54 = vpop.permute.xlu0 %737 }
 0x85e   :  { %v743_v55 = vsel %vm520_vm5, %v738_v54, 0 }
 0x85f   :  { %1792 = vmatpush3.bf16.msra.mxu1 %v743_v55 }
 0x860   :  { %v1956_v40 = vpop.eup %1955  ;;  %1803 = vmatprep.subr.bf16.mxu1 %v2232_v15 }
 0x861   :  { %v732_v57 = vmul.f32 %v1956_v40, %v1952_v47  ;;  %v834_v2 = vpop.permute.xlu0 %833 }
 0x863   :  { %v735_v58 = vpack.c.bf16 %v732_v57, %v732_v57 }
 0x864   :  { %v1958_v59 = vpop.eup %1957 }
 0x865   :  { %v734_v60 = vmul.f32 %v1958_v59, %v1954_v49  ;;  %1794 = vmatmul.mubr.msk.bf16.vlgmr.msra.gmra.mrb[12].mxu1 %vm394_vm4, %v735_v58 }
 0x866   :  { %1805 = vmatprep.mubr.msk.bf16.mxu1 %vm2233_vm1, %v2232_v15 }
 0x867   :  { %v736_v0 = vpack.c.bf16 %v734_v60, %v734_v60 }
 0x868   :  { %1804 = vmatpush3.bf16.xpose.msra.mxu1 %v841_v63 }
 0x869   :  { %1800 = vmatmul.mubr.msk.bf16.vlgmr.msra.gmra.mrb[16].mxu0 %vm394_vm4, %v736_v0  ;;  %1815 = vmatprep.subr.bf16.mxu1 %v2232_v15 }
 0x86a   :  { %1810 = vmatpush3.bf16.xpose.msra.mxu0 %v891_v1  ;;  %1811 = vmatprep.mubr.msk.bf16.mxu0 %vm2233_vm1, %v2232_v15 }
 0x86b   :  { %1821 = vmatprep.subr.bf16.mxu0 %v2232_v15 }
 0x86f   :  { %1806 = vmatmul.mubr.msk.bf16.vlgmr.msra.gmra.mrb[16].mxu1 %vm394_vm4, %v834_v2 }
 0x870   :  { %1817 = vmatprep.mubr.msk.bf16.mxu1 %vm2233_vm1, %v2232_v15 }
 0x871   :  { %1812 = vmatmul.mubr.msk.bf16.vlgmr.msra.gmra.mrb[20].mxu0 %vm394_vm4, %v884_v3 }
 0x872   :  { %1823 = vmatprep.mubr.msk.bf16.mxu0 %vm2233_vm1, %v2232_v15 }
 0x938   :  { %v2634_v4 = vpop.f32.mrb[12].mxu1 }
 0x939   :  { %v1795_v5 = vpop.f32.mrb[13].mxu1 }
 0x93a   :  { %v782_v7 = vpop.f32.mrb[14].mxu1 }
 0x93b   :  { %v1796_v36 = vpop.f32.mrb[15].mxu1 }
 0x93c   :  { %v2636_v8 = vpop.f32.mrb[16].mxu0 }
 0x93d   :  { %v1914_v9 = vpack.i.bf16 %v2636_v8, %v2634_v4  ;;  %v1801_v10 = vpop.f32.mrb[17].mxu0 }
 0x93e   :  { %v830_v11 = vpop.f32.mrb[18].mxu0 }
 0x93f   :  { %v1802_v13 = vpop.f32.mrb[19].mxu0 }
 0x942   :  { %v877_v14 = vpop.f32.mrb[16].mxu1 }
 0x943   :  { %v1807_v16 = vpop.f32.mrb[17].mxu1  ;;  %v933_v18 = vsel %vm394_vm4, %v877_v14, -inf }
 0x944   :  { %934 = vmax.xlane.f32.xlu0 %v933_v18  ;;  %v880_v19 = vpop.f32.mrb[18].mxu1  ;;  %v927_v20 = vpop.f32.mrb[20].mxu0 }
 0x945   :  { %v1808_v22 = vpop.f32.mrb[19].mxu1  ;;  %v1813_v23 = vpop.f32.mrb[21].mxu0  ;;  %v936_v24 = vsel %vm394_vm4, %v927_v20, -inf }
 0x946   :  { %937 = vmax.xlane.f32.xlu1 %v936_v24  ;;  %v930_v25 = vpop.f32.mrb[22].mxu0 }
 0x947   :  { %v1814_v26 = vpop.f32.mrb[23].mxu0 }
 0x957   :  { %1005 = vrot.lane.b32.xlu1 %v2566_v50, %s2248_s15 }
 0x95b   :  { %1055 = vrot.lane.b32.xlu1 %v2529_v6, %s2249_s26 }
 0x95f   :  { %1105 = vrot.lane.b32.xlu1 %v2534_v12, %s2249_s26 }
 0x963   :  { %1103 = vrot.lane.b32.xlu1 %v2556_v38, %s2250_s27 }
 0x9d1   :  { %v935_v27 = vpop.xlane.xlu0 %934 }
 0x9d2   :  { %v939_v28 = vsub.f32 %v877_v14, %v935_v27 }
 0x9d3   :  { %v938_v29 = vpop.xlane.xlu1 %937 }
 0x9d4   :  { %v941_v31 = vmul.f32 1.442695, %v939_v28  ;;  %v940_v32 = vsub.f32 %v927_v20, %v938_v29 }
 0x9d6   :  { %1959 = vpow2.f32 %v941_v31  ;;  %v943_v33 = vmul.f32 1.442695, %v940_v32 }
 0x9d7   :  { %v1006_v34 = vpop.permute.xlu1 %1005 }
 0x9d8   :  { %1961 = vpow2.f32 %v943_v33  ;;  %v1011_v35 = vsel %vm520_vm5, %v1006_v34, 0 }
 0x9d9   :  { %1822 = vmatpush3.bf16.msra.mxu0 %v1011_v35 }
 0x9da   :  { %1833 = vmatprep.subr.bf16.mxu0 %v2232_v15 }
 0x9db   :  { %v1056_v45 = vpop.permute.xlu1 %1055 }
 0x9df   :  { %v1106_v51 = vpop.permute.xlu1 %1105 }
 0x9e0   :  { %v1960_v6 = vpop.eup %1959  ;;  %v1111_v53 = vsel %vm394_vm4, %v1106_v51, 0 }
 0x9e1   :  { %v945_v12 = vsel %vm394_vm4, %v1960_v6, 0.0 }
 0x9e2   :  { %v1962_v37 = vpop.eup %1961  ;;  %946 = vadd.xlane.f32.xlu0 %v945_v12  ;;  %v1932_v12 = vld [vmem:[%s2768_s3 + $0x8] sm:$0xff]  }
 0x9e3   :  { %v948_v38 = vsel %vm394_vm4, %v1962_v37, 0.0  ;;  %v1104_v55 = vpop.permute.xlu1 %1103 }
 0x9e6   :  { %949 = vadd.xlane.f32.xlu0 %v948_v38 }
 0x9fc   :  { %957 = vrot.lane.b32.xlu0 %v2578_v62, %s2248_s15 }
 0xa00   :  { %1053 = vrot.lane.b32.xlu0 %v2546_v30, %s2250_s27  ;;  %v1061_v30 = vsel %vm394_vm4, %v1056_v45, 0 }
 0xa6f   :  { %v947_v39 = vpop.xlane.xlu0 %946 }
 0xa70   :  { %1963 = vrcp.f32 %v947_v39 }
 0xa73   :  { %v950_v41 = vpop.xlane.xlu0 %949 }
 0xa74   :  { %1965 = vrcp.f32 %v950_v41 }
 0xa77   :  { %v958_v42 = vpop.permute.xlu0 %957 }
 0xa78   :  { %v963_v43 = vsel %vm520_vm5, %v958_v42, 0 }
 0xa79   :  { %1816 = vmatpush3.bf16.msra.mxu1 %v963_v43 }
 0xa7a   :  { %v1964_v44 = vpop.eup %1963  ;;  %1827 = vmatprep.subr.bf16.mxu1 %v2232_v15 }
 0xa7b   :  { %v952_v46 = vmul.f32 %v1964_v44, %v1960_v6  ;;  %v1054_v54 = vpop.permute.xlu0 %1053  ;;  %v1931_v6 = vld [vmem:[%s2768_s3] sm:$0xff]  }
 0xa7d   :  { %v955_v47 = vpack.c.bf16 %v952_v46, %v952_v46 }
 0xa7e   :  { %v1966_v48 = vpop.eup %1965 }
 0xa7f   :  { %v954_v49 = vmul.f32 %v1966_v48, %v1962_v37  ;;  %1818 = vmatmul.mubr.msk.bf16.vlgmr.msra.gmra.mrb[20].mxu1 %vm394_vm4, %v955_v47 }
 0xa80   :  { %1829 = vmatprep.mubr.msk.bf16.mxu1 %vm2233_vm1, %v2232_v15 }
 0xa81   :  { %v956_v52 = vpack.c.bf16 %v954_v49, %v954_v49 }
 0xa82   :  { %1828 = vmatpush3.bf16.xpose.msra.mxu1 %v1061_v30 }
 0xa83   :  { %1824 = vmatmul.mubr.msk.bf16.vlgmr.msra.gmra.mrb[24].mxu0 %vm394_vm4, %v956_v52  ;;  %1839 = vmatprep.subr.bf16.mxu1 %v2232_v15 }
 0xa84   :  { %1834 = vmatpush3.bf16.xpose.msra.mxu0 %v1111_v53  ;;  %1835 = vmatprep.mubr.msk.bf16.mxu0 %vm2233_vm1, %v2232_v15 }
 0xa85   :  { %1845 = vmatprep.subr.bf16.mxu0 %v2232_v15 }
 0xa89   :  { %1830 = vmatmul.mubr.msk.bf16.vlgmr.msra.gmra.mrb[24].mxu1 %vm394_vm4, %v1054_v54 }
 0xa8a   :  { %1841 = vmatprep.mubr.msk.bf16.mxu1 %vm2233_vm1, %v2232_v15 }
 0xa8b   :  { %1836 = vmatmul.mubr.msk.bf16.vlgmr.msra.gmra.mrb[28].mxu0 %vm394_vm4, %v1104_v55 }
 0xa8c   :  { %1847 = vmatprep.mubr.msk.bf16.mxu0 %vm2233_vm1, %v2232_v15 }
 0xb52   :  { %v999_v40 = vpop.f32.mrb[20].mxu1 }
 0xb53   :  { %v1819_v56 = vpop.f32.mrb[21].mxu1 }
 0xb54   :  { %v1002_v57 = vpop.f32.mrb[22].mxu1 }
 0xb55   :  { %v1820_v58 = vpop.f32.mrb[23].mxu1 }
 0xb56   :  { %v1047_v59 = vpop.f32.mrb[24].mxu0 }
 0xb57   :  { %v1919_v60 = vpack.i.bf16 %v1047_v59, %v999_v40  ;;  %v1825_v61 = vpop.f32.mrb[25].mxu0 }
 0xb58   :  { %v1050_v63 = vpop.f32.mrb[26].mxu0 }
 0xb59   :  { %v1826_v0 = vpop.f32.mrb[27].mxu0  ;;  %v1679_v63 = vld [vmem:[#allocation2] ss:$0 sm:$0xff] }
 0xb5c   :  { %v1097_v1 = vpop.f32.mrb[24].mxu1 }
 0xb5d   :  { %v1831_v2 = vpop.f32.mrb[25].mxu1  ;;  %v1153_v3 = vsel %vm394_vm4, %v1097_v1, -inf }
 0xb5e   :  { %1154 = vmax.xlane.f32.xlu0 %v1153_v3  ;;  %v1100_v5 = vpop.f32.mrb[26].mxu1  ;;  %v1147_v7 = vpop.f32.mrb[28].mxu0 }
 0xb5f   :  { %v1832_v36 = vpop.f32.mrb[27].mxu1  ;;  %v1837_v10 = vpop.f32.mrb[29].mxu0  ;;  %v1156_v11 = vsel %vm394_vm4, %v1147_v7, -inf }
 0xb60   :  { %1157 = vmax.xlane.f32.xlu1 %v1156_v11  ;;  %v1150_v13 = vpop.f32.mrb[30].mxu0  ;;  %v1988_v36 = vld [vmem:[%s2784_s21 + $0x8] sm:$0xff] }
 0xb61   :  { %v1838_v14 = vpop.f32.mrb[31].mxu0 }
 0xb71   :  { %1225 = vrot.lane.b32.xlu1 %v2566_v50, %s2251_s8 }
 0xb75   :  { %1915 = vrot.lane.b32.xlu1 %v1914_v9, %s2226_s18 }
 0xb79   :  { %1920 = vrot.lane.b32.xlu1 %v1919_v60, %s2252_s1 }
 0xbeb   :  { %v1155_v16 = vpop.xlane.xlu0 %1154 }
 0xbec   :  { %v1159_v18 = vsub.f32 %v1097_v1, %v1155_v16 }
 0xbed   :  { %v1158_v19 = vpop.xlane.xlu1 %1157 }
 0xbee   :  { %v1161_v20 = vmul.f32 1.442695, %v1159_v18  ;;  %v1160_v22 = vsub.f32 %v1147_v7, %v1158_v19 }
 0xbf0   :  { %1967 = vpow2.f32 %v1161_v20  ;;  %v1163_v23 = vmul.f32 1.442695, %v1160_v22 }
 0xbf1   :  { %v1226_v24 = vpop.permute.xlu1 %1225 }
 0xbf2   :  { %1969 = vpow2.f32 %v1163_v23  ;;  %v1231_v25 = vsel %vm520_vm5, %v1226_v24, 0 }
 0xbf3   :  { %1846 = vmatpush3.bf16.msra.mxu0 %v1231_v25 }
 0xbf4   :  { %1859 = vmatprep.subr.bf16.mxu0 %v2232_v15 }
 0xbf5   :  { %v1916_v47 = vpop.permute.xlu1 %1915 }
 0xbf6   :  { %v1918_v49 = vunpack.i.h.bf16 %v1916_v47  ;;  %v1917_v51 = vunpack.i.l.bf16 %v1916_v47 }
 0xbf8   :  { %v1298_v54 = vsel %vm394_vm4, %v2602_v21, %v1918_v49  ;;  %v1297_v55 = vsel %vm394_vm4, %v2600_v17, %v1917_v51  ;;  %v1987_v17 = vld [vmem:[%s2784_s21] sm:$0xff] }
 0xbf9   :  { %v1921_v48 = vpop.permute.xlu1 %1920 }
 0xbfa   :  { %v1968_v50 = vpop.eup %1967  ;;  %v1923_v30 = vunpack.i.h.bf16 %v1921_v48  ;;  %v1922_v52 = vunpack.i.l.bf16 %v1921_v48 }
 0xbfb   :  { %v1165_v4 = vsel %vm394_vm4, %v1968_v50, 0.0 }
 0xbfc   :  { %v1970_v8 = vpop.eup %1969  ;;  %1166 = vadd.xlane.f32.xlu0 %v1165_v4  ;;  %v1300_v57 = vsel %vm1299_vm6, %v1297_v55, %v1922_v52  ;;  %v1301_v58 = vsel %vm1299_vm6, %v1298_v54, %v1923_v30  ;;  %v1933_v4 = vld [vmem:[%s2774_s9] sm:$0xff]  }
 0xbfd   :  { %v1168_v9 = vsel %vm394_vm4, %v1970_v8, 0.0 }
 0xc00   :  { %1169 = vadd.xlane.f32.xlu0 %v1168_v9 }
 0xc16   :  { %1177 = vrot.lane.b32.xlu0 %v2578_v62, %s2251_s8 }
 0xc89   :  { %v1167_v26 = vpop.xlane.xlu0 %1166 }
 0xc8a   :  { %1971 = vrcp.f32 %v1167_v26 }
 0xc8d   :  { %v1170_v27 = vpop.xlane.xlu0 %1169 }
 0xc8e   :  { %1973 = vrcp.f32 %v1170_v27 }
 0xc91   :  { %v1178_v28 = vpop.permute.xlu0 %1177 }
 0xc92   :  { %v1183_v29 = vsel %vm520_vm5, %v1178_v28, 0 }
 0xc93   :  { %1840 = vmatpush3.bf16.msra.mxu1 %v1183_v29 }
 0xc94   :  { %v1972_v31 = vpop.eup %1971  ;;  %1851 = vmatprep.subr.bf16.mxu1 %v2232_v15 }
 0xc95   :  { %v1172_v32 = vmul.f32 %v1972_v31, %v1968_v50 }
 0xc97   :  { %v1175_v33 = vpack.c.bf16 %v1172_v32, %v1172_v32 }
 0xc98   :  { %v1974_v34 = vpop.eup %1973 }
 0xc99   :  { %v1174_v35 = vmul.f32 %v1974_v34, %v1970_v8  ;;  %1842 = vmatmul.mubr.msk.bf16.vlgmr.msra.gmra.mrb[28].mxu1 %vm394_vm4, %v1175_v33  ;;  %v1934_v8 = vld [vmem:[%s2774_s9 + $0x8] sm:$0xff]   ;;  %v1683_v34 = vld [vmem:[#allocation8] ss:$0 sm:$0xff] }
 0xc9a   :  { %1855 = vmatprep.mubr.msk.bf16.mxu1 %vm2233_vm1, %v2232_v15  ;;  %1852 = vmatpush3.bf16.msra.mxu1 %v1931_v6 }
 0xc9b   :  { %v1176_v62 = vpack.c.bf16 %v1174_v35, %v1174_v35  ;;  %1853 = vmatprep.subr.bf16.mxu1 %v2232_v15 }
 0xc9d   :  { %1848 = vmatmul.mubr.msk.bf16.vlgmr.msra.gmra.mrb[32].mxu0 %vm394_vm4, %v1176_v62 }
 0xc9e   :  { %1863 = vmatprep.mubr.msk.bf16.mxu0 %vm2233_vm1, %v2232_v15  ;;  %1854 = vmatpush3.bf16.msra.mxu1 %v1932_v12  ;;  %v1684_v12 = vld [vmem:[#allocation10] ss:$0 sm:$0xff] }
 0xc9f   :  { %1867 = vmatprep.subr.bf16.mxu1 %v2232_v15  ;;  %1860 = vmatpush3.bf16.msra.mxu0 %v1933_v4 }
 0xca0   :  { %1861 = vmatprep.subr.bf16.mxu0 %v2232_v15 }
 0xca3   :  { %1862 = vmatpush3.bf16.msra.mxu0 %v1934_v8 }
 0xd6c   :  { %v1219_v37 = vpop.f32.mrb[28].mxu1 }
 0xd6d   :  { %v1843_v38 = vpop.f32.mrb[29].mxu1 }
 0xd6e   :  { %v1222_v39 = vpop.f32.mrb[30].mxu1 }
 0xd6f   :  { %v1844_v41 = vpop.f32.mrb[31].mxu1 }
 0xd70   :  { %v1267_v42 = vpop.f32.mrb[32].mxu0 }
 0xd71   :  { %v1924_v43 = vpack.i.bf16 %v1267_v42, %v1219_v37  ;;  %v1849_v44 = vpop.f32.mrb[33].mxu0  ;;  %v1935_v42 = vld [vmem:[%s2776_s11] sm:$0xff]  }
 0xd72   :  { %v1270_v45 = vpop.f32.mrb[34].mxu0  ;;  %v1937_v44 = vld [vmem:[%s2776_s11 + $0x10] sm:$0xff]  }
 0xd73   :  { %1925 = vrot.lane.b32.xlu0 %v1924_v43, %s2253_s2  ;;  %v1850_v46 = vpop.f32.mrb[35].mxu0  ;;  %v1936_v43 = vld [vmem:[%s2776_s11 + $0x8] sm:$0xff]   ;;  %v1938_v45 = vld [vmem:[%s2776_s11 + $0x18] sm:$0xff]   ;;  %s2255_s11 = smov [#allocation17]  }
 0xd74   :  { %v1685_v46 = vld [vmem:[#allocation11] ss:$0 sm:$0xff]  ;;  %s1635_s25 = sshll.u32 %s2255_s11, 4  ;;  %s1636_s25 = int_to_ptr.vmem [resolvable:$true] %s1635_s25 }
 0xd75   :  { %s2187_s15 = scalar_lea.vmem %s1636_s25, 256  ;;  %p2192_p3 = scmp.lt.s32.totalorder %s1636_s25, %s1636_s25 }
 0xd76   :  { %p2188_p2 = scmp.ne.s32.totalorder %s1636_s25, %s2187_s15  ;;  %p2193_p4 = scmp.lt.s32.totalorder %s2187_s15, %s2187_s15 }
 0xd78   :  { %p2194_p5 = por %p2193_p4, %p2192_p3 }
 0xd7a   :  { %p2195_p6 = pnand %p2194_p5, %p2188_p2 }
 0xde5   :  { %v1926_v53 = vpop.permute.xlu0 %1925 }
 0xde6   :  { %v1928_v40 = vunpack.i.h.bf16 %v1926_v53  ;;  %v1927_v56 = vunpack.i.l.bf16 %v1926_v53 }
 0xde8   :  { %v1304_v59 = vsel %vm1302_vm7, %v1301_v58, %v1928_v40  ;;  %v1303_v60 = vsel %vm1302_vm7, %v1300_v57, %v1927_v56 }
 0xde9   :  { %v1305_v61 = vpack.c.bf16 %v1304_v59, %v1303_v60 }
 0xdeb   :  { %1856 = vmatmul.mubr.msk.bf16.vlgmr.msra.gmra.mrb[32].mxu1 %vm167_vm0, %v1305_v61 }
 0xdec   :  { %1875 = vmatprep.mubr.msk.bf16.mxu1 %vm2233_vm1, %v2232_v15  ;;  %1868 = vmatpush3.bf16.msra.mxu1 %v1935_v42 }
 0xded   :  { %1869 = vmatprep.subr.bf16.mxu1 %v2232_v15 }
 0xdf0   :  { %1870 = vmatpush3.bf16.msra.mxu1 %v1936_v43  ;;  %v1689_v43 = vld [vmem:[#allocation13] ss:$0 sm:$0xff] }
 0xdf1   :  { %1871 = vmatprep.subr.bf16.mxu1 %v2232_v15 }
 0xdf4   :  { %1872 = vmatpush3.bf16.msra.mxu1 %v1937_v44 }
 0xdf5   :  { %1873 = vmatprep.subr.bf16.mxu1 %v2232_v15 }
 0xdf8   :  { %1874 = vmatpush3.bf16.msra.mxu1 %v1938_v45 }
 0xebe   :  { %v1366_v0 = vpop.f32.mrb[32].mxu1 }
 0xebf   :  { %v1367_v1 = vadd.f32 %v1679_v63, %v1366_v0  ;;  %v1857_v2 = vpop.f32.mrb[33].mxu1 }
 0xec0   :  { %v1369_v21 = vpop.f32.mrb[34].mxu1 }
 0xec1   :  { %v2708_v3 = vadd.f32 %v1987_v17, %v1367_v1  ;;  %v1370_v5 = vadd.f32 %v1679_v63, %v1369_v21  ;;  %v1858_v7 = vpop.f32.mrb[35].mxu1 }
 0xec3   :  { %v2713_v10 = vadd.f32 %v1988_v36, %v1370_v5  ;;  %v1377_v11 = vsel %vm167_vm0, %v2708_v3, 0.0 }
 0xec4   :  { %1378 = vadd.xlane.f32.xlu1 %v1377_v11 }
 0xec5   :  { %v1380_v13 = vsel %vm167_vm0, %v2713_v10, 0.0 }
 0xec6   :  { %1381 = vadd.xlane.f32.xlu0 %v1380_v13 }
 0xf51   :  { %v1379_v14 = vpop.xlane.xlu1 %1378 }
 0xf52   :  { %v1383_v16 = vmul.f32 0.03125, %v1379_v14 }
 0xf53   :  { %v1382_v18 = vpop.xlane.xlu0 %1381 }
 0xf54   :  { %v1385_v19 = vsub.f32 %v2708_v3, %v1383_v16  ;;  %v1384_v20 = vmul.f32 0.03125, %v1382_v18 }
 0xf56   :  { %v1386_v22 = vsub.f32 %v2713_v10, %v1384_v20  ;;  %v1387_v23 = vmul.f32 %v1385_v19, %v1385_v19 }
 0xf58   :  { %v1389_v24 = vsel %vm167_vm0, %v1387_v23, 0.0  ;;  %v1388_v25 = vmul.f32 %v1386_v22, %v1386_v22 }
 0xf59   :  { %1390 = vadd.xlane.f32.xlu0 %v1389_v24 }
 0xf5a   :  { %v1392_v50 = vsel %vm167_vm0, %v1388_v25, 0.0 }
 0xf5d   :  { %1393 = vadd.xlane.f32.xlu0 %v1392_v50 }
 0xfe6   :  { %v1391_v9 = vpop.xlane.xlu0 %1390 }
 0xfe7   :  { %v1395_v26 = vmul.f32 0.03125, %v1391_v9 }
 0xfe9   :  { %v1397_v27 = vadd.f32 1e-05, %v1395_v26 }
 0xfea   :  { %v1394_v28 = vpop.xlane.xlu0 %1393 }
 0xfeb   :  { %1975 = vrsqrt.f32 %v1397_v27  ;;  %v1396_v29 = vmul.f32 0.03125, %v1394_v28 }
 0xfed   :  { %v1398_v31 = vadd.f32 1e-05, %v1396_v29  ;;  %v2254_v29 = vmov -1.0  }
 0xfef   :  { %1977 = vrsqrt.f32 %v1398_v31 }
 0xff5   :  { %v1976_v32 = vpop.eup %1975 }
 0xff6   :  { %v1401_v33 = vmul.f32 %v1976_v32, %v1385_v19 }
 0xff8   :  { %v1409_v62 = vmul.f32 %v1683_v34, %v1401_v33 }
 0xff9   :  { %v1978_v35 = vpop.eup %1977 }
 0xffa   :  { %v1402_v6 = vmul.f32 %v1978_v35, %v1386_v22  ;;  %v1417_v38 = vadd.f32 %v1684_v12, %v1409_v62 }
 0xffc   :  { %v1410_v37 = vmul.f32 %v1683_v34, %v1402_v6 }
 0xffe   :  { %v1418_v39 = vadd.f32 %v1684_v12, %v1410_v37 }
0x1000   :  { %v1419_v41 = vpack.c.bf16 %v1418_v39, %v1417_v38 }
0x1002   :  { %1864 = vmatmul.mubr.msk.bf16.vlgmr.msra.gmra.mrb[36].mxu0 %vm167_vm0, %v1419_v41 }
0x10d5   :  { %v1480_v47 = vpop.f32.mrb[36].mxu0 }
0x10d6   :  { %v1481_v48 = vadd.f32 %v1685_v46, %v1480_v47  ;;  %v1865_v49 = vpop.f32.mrb[37].mxu0 }
0x10d7   :  { %v1483_v51 = vpop.f32.mrb[38].mxu0 }
0x10d8   :  { %v1489_v30 = vmul.f32 0.70710677, %v1481_v48  ;;  %v1484_v52 = vadd.f32 %v1685_v46, %v1483_v51  ;;  %v1866_v53 = vpop.f32.mrb[39].mxu0  ;;  %v1487_v12 = vmul.f32 0.5, %v1481_v48 }
0x10da   :  { %v1495_v54 = vand.u32 2147483647, %v1489_v30  ;;  %v1490_v55 = vmul.f32 0.70710677, %v1484_v52  ;;  %vm1491_vm8 = vcmp.ge.f32.partialorder %v1489_v30, 0.0  ;;  %v1488_v37 = vmul.f32 0.5, %v1484_v52 }
0x10db   :  { %v1493_v31 = vsel %vm1491_vm8, 1.0, %v2254_v29 }
0x10dc   :  { %v1497_v40 = vmul.f32 0.3275911, %v1495_v54  ;;  %v1496_v56 = vand.u32 2147483647, %v1490_v55  ;;  %v1523_v59 = vsub.f32 0.0, %v1495_v54  ;;  %vm1492_vm9 = vcmp.ge.f32.partialorder %v1490_v55, 0.0 }
0x10dd   :  { %v1494_v35 = vsel %vm1492_vm9, 1.0, %v2254_v29 }
0x10de   :  { %v1499_v57 = vadd.f32 1.0, %v1497_v40  ;;  %v1498_v58 = vmul.f32 0.3275911, %v1496_v56  ;;  %v1524_v60 = vsub.f32 0.0, %v1496_v56  ;;  %v1525_v63 = vmul.f32 %v1523_v59, %v1495_v54 }
0x10e0   :  { %1979 = vrcp.f32 %v1499_v57  ;;  %v1500_v15 = vadd.f32 1.0, %v1498_v58  ;;  %v1526_v21 = vmul.f32 %v1524_v60, %v1496_v56  ;;  %v1527_v17 = vmul.f32 1.442695, %v1525_v63 }
0x10e2   :  { %1981 = vrcp.f32 %v1500_v15  ;;  %v1529_v13 = vmul.f32 1.442695, %v1526_v21 }
0x10e3   :  { %1983 = vpow2.f32 %v1527_v17 }
0x10e4   :  { %1985 = vpow2.f32 %v1529_v13 }
0x10ea   :  { %v1980_v61 = vpop.eup %1979 }
0x10eb   :  { %v1505_v0 = vmul.f32 1.0614054, %v1980_v61 }
0x10ec   :  { %v1982_v1 = vpop.eup %1981 }
0x10ed   :  { %v1507_v2 = vadd.f32 -1.4531521, %v1505_v0  ;;  %v1506_v5 = vmul.f32 1.0614054, %v1982_v1  ;;  %v1984_v4 = vpop.eup %1983 }
0x10ee   :  { %v1986_v27 = vpop.eup %1985 }
0x10ef   :  { %v1509_v7 = vmul.f32 %v1980_v61, %v1507_v2  ;;  %v1508_v36 = vadd.f32 -1.4531521, %v1506_v5 }
0x10f1   :  { %v1511_v11 = vadd.f32 1.4214138, %v1509_v7  ;;  %v1510_v14 = vmul.f32 %v1982_v1, %v1508_v36 }
0x10f3   :  { %v1513_v16 = vmul.f32 %v1980_v61, %v1511_v11  ;;  %v1512_v18 = vadd.f32 1.4214138, %v1510_v14 }
0x10f5   :  { %v1515_v19 = vadd.f32 -0.28449672, %v1513_v16  ;;  %v1514_v20 = vmul.f32 %v1982_v1, %v1512_v18 }
0x10f7   :  { %v1517_v22 = vmul.f32 %v1980_v61, %v1515_v19  ;;  %v1516_v23 = vadd.f32 -0.28449672, %v1514_v20 }
0x10f9   :  { %v1519_v24 = vadd.f32 0.2548296, %v1517_v22  ;;  %v1518_v25 = vmul.f32 %v1982_v1, %v1516_v23 }
0x10fb   :  { %v1521_v50 = vmul.f32 %v1980_v61, %v1519_v24  ;;  %v1520_v8 = vadd.f32 0.2548296, %v1518_v25 }
0x10fd   :  { %v1531_v9 = vmul.f32 %v1984_v4, %v1521_v50  ;;  %v1522_v26 = vmul.f32 %v1982_v1, %v1520_v8 }
0x10ff   :  { %v1533_v28 = vsub.f32 1.0, %v1531_v9  ;;  %v1532_v32 = vmul.f32 %v1986_v27, %v1522_v26 }
0x1101   :  { %v1535_v33 = vmul.f32 %v1533_v28, %v1493_v31  ;;  %v1534_v34 = vsub.f32 1.0, %v1532_v32 }
0x1103   :  { %v1537_v62 = vadd.f32 1.0, %v1535_v33  ;;  %v1536_v6 = vmul.f32 %v1534_v34, %v1494_v35 }
0x1105   :  { %v1538_v38 = vadd.f32 1.0, %v1536_v6  ;;  %v1539_v39 = vmul.f32 %v1537_v62, %v1487_v12 }
0x1107   :  { %v1540_v41 = vmul.f32 %v1538_v38, %v1488_v37 }
0x1109   :  { %v1541_v42 = vpack.c.bf16 %v1540_v41, %v1539_v39 }
0x110b   :  { %1876 = vmatmul.mubr.msk.bf16.vlgmr.msra.gmra.mrb[36].mxu1 %vm1581_vm10, %v1541_v42 }
0x11de   :  { %v1619_v44 = vpop.f32.mrb[36].mxu1 }
0x11df   :  { %v1620_v45 = vadd.f32 %v1689_v43, %v1619_v44  ;;  %v1877_v46 = vpop.f32.mrb[37].mxu1 }
0x11e0   :  { %v1622_v47 = vpop.f32.mrb[38].mxu1 }
0x11e1   :  { %v1626_v49 = vadd.f32 %v1620_v45, %v2708_v3  ;;  %v1623_v51 = vadd.f32 %v1689_v43, %v1622_v47  ;;  %v1878_v30 = vpop.f32.mrb[39].mxu1 }
0x11e3   :  { %1628 = vst.msk [vmem:[#allocation17] sm:$0xff] %vm167_vm0, %v1626_v49  ;;  %v1627_v48 = vadd.f32 %v1623_v51, %v2713_v10 }
0x11e5   :  { %1629 = vst.msk [vmem:[#allocation17 + $0x8] sm:$0xff] %vm167_vm0, %v1627_v48 }
0x11e6   :  { %2198 = shalt.err (!%p2195_p6)
}
0x11e7   :  { %s2199_s8 = scalar_lea.hbm %s2781_s16, 256 }
0x11e8   :  { %p2200_p7 = scmp.ne.s32.totalorder %s2781_s16, %s2199_s8  ;;  %p2203_p8 = scmp.lt.u32.totalorder %s2199_s8, %s2781_s16 }
0x11ea   :  { %p2205_p9 = pnand %p2203_p8, %p2200_p7 }
0x11ec   :  { %2208 = shalt.err (!%p2205_p9)
}
0x11ed   :  { %1641 = dma.vmem_to_hbm [thread:$0]  %s1636_s25, 256, %s2781_s16, [#allocation4], %s2225_s10, %s2225_s10, %s2226_s18  }
0x11ee   :  { %2219 = dma.done.wait [#allocation4], 256  }
0x11ef   :  { %2220 = vsyncadd [#allocation4], 4294967040 }
0x11f0   :  { %1645 = vsyncpa [#allocation3], 1 }
0x11f1   :  { %1646 = vsyncpa [#allocation6], 1 }
0x11f2   :  { %1647 = vsyncpa [#allocation9], 1 }
0x11f3   :  { %1648 = vsyncpa [#allocation12], 1 }
0x11f4   :  { %1649 = vsyncpa [#allocation15], 1 }
0x11f5   :  { %1650 = vsyncpa [#allocation4], 1 }

</bundles_post_ra>
